<compile_context>
chip_gen: v5e
topology: v5e:2x2
jax: 0.10.0
libtpu: 0.0.40
codegen_flags: <defaults>
</compile_context>

<pallas_src>
import functools

import jax
import jax.numpy as jnp
from jax.experimental import pallas as pl
from jax.experimental.pallas import tpu as pltpu


_VMEM_LIMIT_BYTES = 32 * 1024 * 1024  # safe on v5e/v6e (128 MiB) and v7x (64 MiB)


# ------------------------------- helpers ----------------------------------- #
def _round_up(x, n):
    return ((x + n - 1) // n) * n


def _pick_oh_tile(oh, ow, row_target):
    """Largest divisor of OH with tile_oh*OW <= row_target, preferring 8-aligned rows."""
    cap = max(1, row_target // ow)
    divs = [d for d in range(1, min(oh, cap) + 1) if oh % d == 0]
    good = [d for d in divs if (d * ow) % 8 == 0]
    return max(good) if good else max(divs)


def _pick_m_tile(m, row_target):
    """Largest divisor of M <= row_target, preferring multiples of 8 (sublane tiling)."""
    cap = max(8, row_target)
    divs = [d for d in range(1, min(m, cap) + 1) if m % d == 0]
    good = [d for d in divs if d % 8 == 0]
    return max(good) if good else max(divs)


# --------------------------- pass 1: conv + stats --------------------------- #
def _conv_stats_kernel(x_ref, w_ref, y_ref, stats_ref, *, kh, kw, stride,
                       tile_oh, ow):
    """Fused im2col conv for one (batch, OH-block) tile + global-stat accumulation.

    x_ref:     (1, Hp, Wp, Cin)        padded NHWC image (resident across OH blocks)
    w_ref:     (KH*KW, Cin, Cout_pad)  per-tap weights (resident across grid)
    y_ref:     (tile_oh*OW, Cout_pad)  f32 conv output tile (lane-dense)
    stats_ref: (1, 2, Cout_pad)        per-image [sum, sumsq] accumulator
    """
    r = pl.program_id(1)                      # OH-block index (reduction axis, last)
    cin = x_ref.shape[-1]
    cp = y_ref.shape[-1]
    tile_rows = tile_oh * ow

    # Rows of the padded input needed by this block of output rows.
    in_rows = (tile_oh - 1) * stride + kh
    row_step = tile_oh * stride
    row0 = r * row_step
    align = row_step & (-row_step)            # largest power-of-two divisor
    if align > 1:
        row0 = pl.multiple_of(row0, align)
    xs = x_ref[0, pl.ds(row0, in_rows), :, :]  # (in_rows, Wp, Cin)

    # KH*KW shifted windows, each a Cin-contracted MXU matmul, f32 accumulate.
    acc = jnp.zeros((tile_rows, cp), jnp.float32)
    for ki in range(kh):
        for kj in range(kw):
            if stride == 1:
                win = xs[ki:ki + tile_oh, kj:kj + ow, :]
            else:
                win = jax.lax.slice(
                    xs, (ki, kj, 0),
                    (ki + (tile_oh - 1) * stride + 1,
                     kj + (ow - 1) * stride + 1, cin),
                    (stride, stride, 1))
            patch = win.reshape(tile_rows, cin)
            acc = acc + jnp.dot(patch, w_ref[ki * kw + kj],
                                preferred_element_type=jnp.float32)

    y_ref[...] = acc

    # Global-BatchNorm statistics: per-image sum / sumsq accumulated across the
    # OH-block ("arbitrary") axis; summed over images in the wrapper.
    @pl.when(r == 0)
    def _init():
        stats_ref[...] = jnp.zeros_like(stats_ref)

    stats_ref[0, 0:1, :] += jnp.sum(acc, axis=0, keepdims=True)
    stats_ref[0, 1:2, :] += jnp.sum(acc * acc, axis=0, keepdims=True)


# -------------------------- pass 2: normalize + relu ------------------------ #
def _bn_apply_kernel(y_ref, scale_ref, shift_ref, o_ref, *, do_relu):
    out = y_ref[...] * scale_ref[...] + shift_ref[...]
    if do_relu:
        out = jnp.maximum(out, 0.0)
    o_ref[...] = out.astype(o_ref.dtype)


# ------------------------------ JAX wrapper --------------------------------- #
def conv_bn(x_nchw, weight, gamma, beta, *, stride, padding, do_relu,
            eps=1e-5, compute_dtype=jnp.bfloat16, block_rows=512):
    """ConvBN forward. x: [N, Cin, H, W]; weight: [Cout, Cin, KH, KW] (no bias)."""
    n, cin, h, w = x_nchw.shape
    cout, cin_w, kh, kw = weight.shape
    assert cin_w == cin
    oh = (h + 2 * padding - kh) // stride + 1
    ow = (w + 2 * padding - kw) // stride + 1
    m = n * oh * ow
    cp = _round_up(cout, 128)                      # lane-dense channel axis
    hp, wp = h + 2 * padding, w + 2 * padding

    # ----- wrapper-side layout glue only (no im2col materialization) -----
    x_nhwc = jnp.transpose(x_nchw, (0, 2, 3, 1)).astype(compute_dtype)
    xp = jnp.pad(x_nhwc, ((0, 0), (padding, padding), (padding, padding), (0, 0)))
    w3 = jnp.transpose(weight, (2, 3, 1, 0)).reshape(kh * kw, cin, cout)
    w3 = jnp.pad(w3, ((0, 0), (0, 0), (0, cp - cout))).astype(compute_dtype)

    # ----- tile selection (keeps double-buffered working set << VMEM budget) -----
    tile_oh = _pick_oh_tile(oh, ow, block_rows)
    tile_rows = tile_oh * ow
    n_blk = oh // tile_oh
    if tile_rows % 8 != 0 and tile_rows != m:      # fall back to whole image / step
        tile_oh, n_blk = oh, 1
        tile_rows = oh * ow
    assert tile_rows % 8 == 0 or tile_rows == m, "output tile rows must be 8-aligned"

    # ----- pass 1: conv (fused im2col) + per-image sum / sumsq -----
    kernel1 = functools.partial(_conv_stats_kernel, kh=kh, kw=kw, stride=stride,
                                tile_oh=tile_oh, ow=ow)
    y2d, stats = pl.pallas_call(
        kernel1,
        out_shape=(jax.ShapeDtypeStruct((m, cp), jnp.float32),
                   jax.ShapeDtypeStruct((n, 2, cp), jnp.float32)),
        grid_spec=pltpu.PrefetchScalarGridSpec(
            num_scalar_prefetch=0,
            grid=(n, n_blk),                       # reduction (OH-block) axis last
            in_specs=[
                # full padded image: block index constant in r -> DMA'd once per image
                pl.BlockSpec((1, hp, wp, cin), lambda b, r: (b, 0, 0, 0)),
                # weights: constant block -> resident across the whole grid
                pl.BlockSpec((kh * kw, cin, cp), lambda b, r: (0, 0, 0)),
            ],
            out_specs=[
                pl.BlockSpec((tile_rows, cp), lambda b, r: (b * n_blk + r, 0)),
                pl.BlockSpec((1, 2, cp), lambda b, r: (b, 0, 0)),
            ],
        ),
        compiler_params=pltpu.CompilerParams(
            dimension_semantics=("parallel", "arbitrary"),   # batch -> megacore on v7x
            vmem_limit_bytes=_VMEM_LIMIT_BYTES),
    )(xp, w3)

    # ----- BatchNorm statistics finalize (tiny, f32) -----
    # Note: sum/sumsq (E[x^2]-E[x]^2) accumulated in f32; for very large M or
    # large channel means switch to a subtract-mean (two-pass) variance.
    s = jnp.sum(stats, axis=0)                     # (2, Cout_pad)
    mean = s[0] / m
    var = jnp.maximum(s[1] / m - mean * mean, 0.0)  # biased variance (training BN)
    inv_std = jax.lax.rsqrt(var + eps)
    gamma_p = jnp.pad(gamma.astype(jnp.float32), (0, cp - cout))
    beta_p = jnp.pad(beta.astype(jnp.float32), (0, cp - cout))
    scale = (gamma_p * inv_std).reshape(1, cp)
    shift = (beta_p - mean * gamma_p * inv_std).reshape(1, cp)

    # ----- pass 2: normalize + affine + ReLU (fully parallel, lane-dense) -----
    tile_m = _pick_m_tile(m, max(block_rows, tile_rows))
    assert tile_m % 8 == 0 or tile_m == m
    kernel2 = functools.partial(_bn_apply_kernel, do_relu=do_relu)
    out2d = pl.pallas_call(
        kernel2,
        out_shape=jax.ShapeDtypeStruct((m, cp), jnp.float32),
        grid_spec=pltpu.PrefetchScalarGridSpec(
            num_scalar_prefetch=0,
            grid=(m // tile_m,),
            in_specs=[
                pl.BlockSpec((tile_m, cp), lambda i: (i, 0)),
                pl.BlockSpec((1, cp), lambda i: (0, 0)),   # scale: resident
                pl.BlockSpec((1, cp), lambda i: (0, 0)),   # shift: resident
            ],
            out_specs=pl.BlockSpec((tile_m, cp), lambda i: (i, 0)),
        ),
        compiler_params=pltpu.CompilerParams(
            dimension_semantics=("parallel",),
            vmem_limit_bytes=_VMEM_LIMIT_BYTES),
    )(y2d, scale, shift)

    out = out2d[:, :cout].reshape(n, oh, ow, cout)
    return jnp.transpose(out, (0, 3, 1, 2))        # NHWC -> NCHW


# -------------------------------- reference --------------------------------- #
def conv_bn_ref(x_nchw, weight, gamma, beta, *, stride, padding, do_relu, eps=1e-5):
    y = jax.lax.conv_general_dilated(
        x_nchw.astype(jnp.float32), weight.astype(jnp.float32),
        window_strides=(stride, stride),
        padding=[(padding, padding), (padding, padding)],
        dimension_numbers=("NCHW", "OIHW", "NCHW"))
    mean = jnp.mean(y, axis=(0, 2, 3), keepdims=True)
    var = jnp.mean((y - mean) ** 2, axis=(0, 2, 3), keepdims=True)  # biased var
    out = (y - mean) * jax.lax.rsqrt(var + eps)
    out = out * gamma.reshape(1, -1, 1, 1) + beta.reshape(1, -1, 1, 1)
    if do_relu:
        out = jnp.maximum(out, 0.0)
    return out


# ----------------------------------- main ------------------------------------ #
if __name__ == "__main__":
    # ConvBN(in_channels=4, out_channels=8, kernel_size=3, stride=1, padding=1,
    #        do_relu=True)
    N, CIN, H, W = 2, 4, 16, 16
    COUT, KH, KW = 8, 3, 3
    STRIDE, PAD, DO_RELU = 1, 1, True

    key = jax.random.PRNGKey(0)
    kx, kw_, kg, kb = jax.random.split(key, 4)
    x = jax.random.normal(kx, (N, CIN, H, W), dtype=jnp.float32)
    weight = jax.random.normal(kw_, (COUT, CIN, KH, KW), dtype=jnp.float32) * 0.1
    gamma = 1.0 + 0.1 * jax.random.normal(kg, (COUT,), dtype=jnp.float32)
    beta = 0.1 * jax.random.normal(kb, (COUT,), dtype=jnp.float32)

    # block_rows=128 at this toy size so the multi-tile stats-accumulation path
    # is actually exercised (OH*OW = 256 per image); raise toward >=512 rows for
    # real shapes per the HBM-roofline sweeps.
    fwd = jax.jit(functools.partial(
        conv_bn, stride=STRIDE, padding=PAD, do_relu=DO_RELU,
        compute_dtype=jnp.bfloat16, block_rows=128))
    out = jax.block_until_ready(fwd(x, weight, gamma, beta))
    assert out.shape == (N, COUT, H, W), out.shape

    # Tight check: same bf16-rounded operands through the f32 reference pipeline
    # (isolates kernel/structure errors from the expected bf16 quantization).
    x_b = x.astype(jnp.bfloat16).astype(jnp.float32)
    w_b = weight.astype(jnp.bfloat16).astype(jnp.float32)
    ref_tight = conv_bn_ref(x_b, w_b, gamma, beta,
                            stride=STRIDE, padding=PAD, do_relu=DO_RELU)
    assert jnp.allclose(out, ref_tight, atol=2e-3, rtol=2e-3), \
        float(jnp.max(jnp.abs(out - ref_tight)))

    # Spec-level check against the full-f32 reference (loose tolerance accounts
    # for the bf16 matmul operands; accumulation and BN math remain f32).
    ref = conv_bn_ref(x, weight, gamma, beta,
                      stride=STRIDE, padding=PAD, do_relu=DO_RELU)
    assert jnp.allclose(out, ref, atol=5e-2, rtol=5e-2), \
        float(jnp.max(jnp.abs(out - ref)))

    print("KERNEL_OK")
</pallas_src>

<mosaic_0001>
module attributes {stable_mosaic.version = 11 : i64} {
  func.func @_conv_stats_kernel(%arg0: i32, %arg1: i32, %arg2: memref<1x18x18x4xbf16, #tpu.memory_space<vmem>>, %arg3: memref<9x4x128xbf16, #tpu.memory_space<vmem>>, %arg4: memref<128x128xf32, #tpu.memory_space<vmem>>, %arg5: memref<1x2x128xf32, #tpu.memory_space<vmem>>) attributes {dimension_semantics = [#tpu.dimension_semantics<parallel>, #tpu.dimension_semantics<arbitrary>], iteration_bounds = array<i64: 2, 2>, scalar_prefetch = 0 : i64, scratch_operands = 0 : i64, tpu.core_type = #tpu.core_type<tc>, window_params = [{transform_indices = @transform_0, window_bounds = array<i64: 1, 18, 18, 4>}, {pipeline_mode = #tpu.pipeline_mode<synchronous>, transform_indices = @transform_1, window_bounds = array<i64: 9, 4, 128>}, {transform_indices = @transform_2, window_bounds = array<i64: 128, 128>}, {transform_indices = @transform_3, window_bounds = array<i64: 1, 2, 128>}]} {
    %c8_i32 = arith.constant 8 : i32
    %0 = arith.muli %arg1, %c8_i32 : i32
    %1 = tpu.assume_multiple %0, 8 : i32
    %c0 = arith.constant 0 : index
    %2 = arith.index_cast %1 : i32 to index
    %c0_0 = arith.constant 0 : index
    %c0_1 = arith.constant 0 : index
    %3 = vector.load %arg2[%c0, %2, %c0_0, %c0_1] : memref<1x18x18x4xbf16, #tpu.memory_space<vmem>>, vector<1x10x18x4xbf16>
    %4 = vector.shape_cast %3 : vector<1x10x18x4xbf16> to vector<10x18x4xbf16>
    %cst = arith.constant 0.000000e+00 : f32
    %5 = vector.broadcast %cst : f32 to vector<128x128xf32>
    %6 = vector.extract_strided_slice %4 {offsets = [0, 0, 0], sizes = [8, 16, 4], strides = [1, 1, 1]} : vector<10x18x4xbf16> to vector<8x16x4xbf16>
    %7 = vector.shape_cast %6 : vector<8x16x4xbf16> to vector<128x4xbf16>
    %c0_2 = arith.constant 0 : index
    %c0_3 = arith.constant 0 : index
    %c0_4 = arith.constant 0 : index
    %8 = vector.load %arg3[%c0_2, %c0_3, %c0_4] : memref<9x4x128xbf16, #tpu.memory_space<vmem>>, vector<1x4x128xbf16>
    %9 = vector.shape_cast %8 : vector<1x4x128xbf16> to vector<4x128xbf16>
    %cst_5 = arith.constant dense<0.000000e+00> : vector<128x128xf32>
    %10 = tpu.matmul %7, %9, %cst_5 {dimension_numbers = #tpu.dot_dimension_numbers<[1], [0], [0], [1], [0, 0, 1, 1], [], []>} : vector<128x4xbf16>, vector<4x128xbf16>, vector<128x128xf32> -> vector<128x128xf32>
    %11 = arith.addf %5, %10 : vector<128x128xf32>
    %12 = vector.extract_strided_slice %4 {offsets = [0, 1, 0], sizes = [8, 16, 4], strides = [1, 1, 1]} : vector<10x18x4xbf16> to vector<8x16x4xbf16>
    %13 = vector.shape_cast %12 : vector<8x16x4xbf16> to vector<128x4xbf16>
    %c1 = arith.constant 1 : index
    %c0_6 = arith.constant 0 : index
    %c0_7 = arith.constant 0 : index
    %14 = vector.load %arg3[%c1, %c0_6, %c0_7] : memref<9x4x128xbf16, #tpu.memory_space<vmem>>, vector<1x4x128xbf16>
    %15 = vector.shape_cast %14 : vector<1x4x128xbf16> to vector<4x128xbf16>
    %cst_8 = arith.constant dense<0.000000e+00> : vector<128x128xf32>
    %16 = tpu.matmul %13, %15, %cst_8 {dimension_numbers = #tpu.dot_dimension_numbers<[1], [0], [0], [1], [0, 0, 1, 1], [], []>} : vector<128x4xbf16>, vector<4x128xbf16>, vector<128x128xf32> -> vector<128x128xf32>
    %17 = arith.addf %11, %16 : vector<128x128xf32>
    %18 = vector.extract_strided_slice %4 {offsets = [0, 2, 0], sizes = [8, 16, 4], strides = [1, 1, 1]} : vector<10x18x4xbf16> to vector<8x16x4xbf16>
    %19 = vector.shape_cast %18 : vector<8x16x4xbf16> to vector<128x4xbf16>
    %c2 = arith.constant 2 : index
    %c0_9 = arith.constant 0 : index
    %c0_10 = arith.constant 0 : index
    %20 = vector.load %arg3[%c2, %c0_9, %c0_10] : memref<9x4x128xbf16, #tpu.memory_space<vmem>>, vector<1x4x128xbf16>
    %21 = vector.shape_cast %20 : vector<1x4x128xbf16> to vector<4x128xbf16>
    %cst_11 = arith.constant dense<0.000000e+00> : vector<128x128xf32>
    %22 = tpu.matmul %19, %21, %cst_11 {dimension_numbers = #tpu.dot_dimension_numbers<[1], [0], [0], [1], [0, 0, 1, 1], [], []>} : vector<128x4xbf16>, vector<4x128xbf16>, vector<128x128xf32> -> vector<128x128xf32>
    %23 = arith.addf %17, %22 : vector<128x128xf32>
    %24 = vector.extract_strided_slice %4 {offsets = [1, 0, 0], sizes = [8, 16, 4], strides = [1, 1, 1]} : vector<10x18x4xbf16> to vector<8x16x4xbf16>
    %25 = vector.shape_cast %24 : vector<8x16x4xbf16> to vector<128x4xbf16>
    %c3 = arith.constant 3 : index
    %c0_12 = arith.constant 0 : index
    %c0_13 = arith.constant 0 : index
    %26 = vector.load %arg3[%c3, %c0_12, %c0_13] : memref<9x4x128xbf16, #tpu.memory_space<vmem>>, vector<1x4x128xbf16>
    %27 = vector.shape_cast %26 : vector<1x4x128xbf16> to vector<4x128xbf16>
    %cst_14 = arith.constant dense<0.000000e+00> : vector<128x128xf32>
    %28 = tpu.matmul %25, %27, %cst_14 {dimension_numbers = #tpu.dot_dimension_numbers<[1], [0], [0], [1], [0, 0, 1, 1], [], []>} : vector<128x4xbf16>, vector<4x128xbf16>, vector<128x128xf32> -> vector<128x128xf32>
    %29 = arith.addf %23, %28 : vector<128x128xf32>
    %30 = vector.extract_strided_slice %4 {offsets = [1, 1, 0], sizes = [8, 16, 4], strides = [1, 1, 1]} : vector<10x18x4xbf16> to vector<8x16x4xbf16>
    %31 = vector.shape_cast %30 : vector<8x16x4xbf16> to vector<128x4xbf16>
    %c4 = arith.constant 4 : index
    %c0_15 = arith.constant 0 : index
    %c0_16 = arith.constant 0 : index
    %32 = vector.load %arg3[%c4, %c0_15, %c0_16] : memref<9x4x128xbf16, #tpu.memory_space<vmem>>, vector<1x4x128xbf16>
    %33 = vector.shape_cast %32 : vector<1x4x128xbf16> to vector<4x128xbf16>
    %cst_17 = arith.constant dense<0.000000e+00> : vector<128x128xf32>
    %34 = tpu.matmul %31, %33, %cst_17 {dimension_numbers = #tpu.dot_dimension_numbers<[1], [0], [0], [1], [0, 0, 1, 1], [], []>} : vector<128x4xbf16>, vector<4x128xbf16>, vector<128x128xf32> -> vector<128x128xf32>
    %35 = arith.addf %29, %34 : vector<128x128xf32>
    %36 = vector.extract_strided_slice %4 {offsets = [1, 2, 0], sizes = [8, 16, 4], strides = [1, 1, 1]} : vector<10x18x4xbf16> to vector<8x16x4xbf16>
    %37 = vector.shape_cast %36 : vector<8x16x4xbf16> to vector<128x4xbf16>
    %c5 = arith.constant 5 : index
    %c0_18 = arith.constant 0 : index
    %c0_19 = arith.constant 0 : index
    %38 = vector.load %arg3[%c5, %c0_18, %c0_19] : memref<9x4x128xbf16, #tpu.memory_space<vmem>>, vector<1x4x128xbf16>
    %39 = vector.shape_cast %38 : vector<1x4x128xbf16> to vector<4x128xbf16>
    %cst_20 = arith.constant dense<0.000000e+00> : vector<128x128xf32>
    %40 = tpu.matmul %37, %39, %cst_20 {dimension_numbers = #tpu.dot_dimension_numbers<[1], [0], [0], [1], [0, 0, 1, 1], [], []>} : vector<128x4xbf16>, vector<4x128xbf16>, vector<128x128xf32> -> vector<128x128xf32>
    %41 = arith.addf %35, %40 : vector<128x128xf32>
    %42 = vector.extract_strided_slice %4 {offsets = [2, 0, 0], sizes = [8, 16, 4], strides = [1, 1, 1]} : vector<10x18x4xbf16> to vector<8x16x4xbf16>
    %43 = vector.shape_cast %42 : vector<8x16x4xbf16> to vector<128x4xbf16>
    %c6 = arith.constant 6 : index
    %c0_21 = arith.constant 0 : index
    %c0_22 = arith.constant 0 : index
    %44 = vector.load %arg3[%c6, %c0_21, %c0_22] : memref<9x4x128xbf16, #tpu.memory_space<vmem>>, vector<1x4x128xbf16>
    %45 = vector.shape_cast %44 : vector<1x4x128xbf16> to vector<4x128xbf16>
    %cst_23 = arith.constant dense<0.000000e+00> : vector<128x128xf32>
    %46 = tpu.matmul %43, %45, %cst_23 {dimension_numbers = #tpu.dot_dimension_numbers<[1], [0], [0], [1], [0, 0, 1, 1], [], []>} : vector<128x4xbf16>, vector<4x128xbf16>, vector<128x128xf32> -> vector<128x128xf32>
    %47 = arith.addf %41, %46 : vector<128x128xf32>
    %48 = vector.extract_strided_slice %4 {offsets = [2, 1, 0], sizes = [8, 16, 4], strides = [1, 1, 1]} : vector<10x18x4xbf16> to vector<8x16x4xbf16>
    %49 = vector.shape_cast %48 : vector<8x16x4xbf16> to vector<128x4xbf16>
    %c7 = arith.constant 7 : index
    %c0_24 = arith.constant 0 : index
    %c0_25 = arith.constant 0 : index
    %50 = vector.load %arg3[%c7, %c0_24, %c0_25] : memref<9x4x128xbf16, #tpu.memory_space<vmem>>, vector<1x4x128xbf16>
    %51 = vector.shape_cast %50 : vector<1x4x128xbf16> to vector<4x128xbf16>
    %cst_26 = arith.constant dense<0.000000e+00> : vector<128x128xf32>
    %52 = tpu.matmul %49, %51, %cst_26 {dimension_numbers = #tpu.dot_dimension_numbers<[1], [0], [0], [1], [0, 0, 1, 1], [], []>} : vector<128x4xbf16>, vector<4x128xbf16>, vector<128x128xf32> -> vector<128x128xf32>
    %53 = arith.addf %47, %52 : vector<128x128xf32>
    %54 = vector.extract_strided_slice %4 {offsets = [2, 2, 0], sizes = [8, 16, 4], strides = [1, 1, 1]} : vector<10x18x4xbf16> to vector<8x16x4xbf16>
    %55 = vector.shape_cast %54 : vector<8x16x4xbf16> to vector<128x4xbf16>
    %c8 = arith.constant 8 : index
    %c0_27 = arith.constant 0 : index
    %c0_28 = arith.constant 0 : index
    %56 = vector.load %arg3[%c8, %c0_27, %c0_28] : memref<9x4x128xbf16, #tpu.memory_space<vmem>>, vector<1x4x128xbf16>
    %57 = vector.shape_cast %56 : vector<1x4x128xbf16> to vector<4x128xbf16>
    %cst_29 = arith.constant dense<0.000000e+00> : vector<128x128xf32>
    %58 = tpu.matmul %55, %57, %cst_29 {dimension_numbers = #tpu.dot_dimension_numbers<[1], [0], [0], [1], [0, 0, 1, 1], [], []>} : vector<128x4xbf16>, vector<4x128xbf16>, vector<128x128xf32> -> vector<128x128xf32>
    %59 = arith.addf %53, %58 : vector<128x128xf32>
    %c0_30 = arith.constant 0 : index
    %c0_31 = arith.constant 0 : index
    %60 = vector.load %arg4[%c0_30, %c0_31] : memref<128x128xf32, #tpu.memory_space<vmem>>, vector<128x128xf32>
    tpu.vector_store %arg4[%c0_30, %c0_31], %59 {strides = array<i32>} : memref<128x128xf32, #tpu.memory_space<vmem>>, vector<128x128xf32>,
    %c0_i32 = arith.constant 0 : i32
    %61 = arith.cmpi eq, %arg1, %c0_i32 : i32
    %62 = arith.extui %61 : i1 to i32
    %c0_i32_32 = arith.constant 0 : i32
    %63 = arith.cmpi ne, %62, %c0_i32_32 : i32
    scf.if %63 {
      %cst_47 = arith.constant 0.000000e+00 : f32
      %81 = vector.broadcast %cst_47 : f32 to vector<1x2x128xf32>
      %c0_48 = arith.constant 0 : index
      %c0_49 = arith.constant 0 : index
      %c0_50 = arith.constant 0 : index
      %82 = vector.load %arg5[%c0_48, %c0_49, %c0_50] : memref<1x2x128xf32, #tpu.memory_space<vmem>>, vector<1x2x128xf32>
      tpu.vector_store %arg5[%c0_48, %c0_49, %c0_50], %81 {strides = array<i32>} : memref<1x2x128xf32, #tpu.memory_space<vmem>>, vector<1x2x128xf32>,
    } else {
    }
    %c0_33 = arith.constant 0 : index
    %c0_34 = arith.constant 0 : index
    %c0_35 = arith.constant 0 : index
    %64 = vector.load %arg5[%c0_33, %c0_34, %c0_35] : memref<1x2x128xf32, #tpu.memory_space<vmem>>, vector<1x1x128xf32>
    %65 = vector.shape_cast %64 : vector<1x1x128xf32> to vector<1x128xf32>
    %cst_36 = arith.constant dense<0.000000e+00> : vector<128xf32>
    %66 = vector.multi_reduction <add>, %59, %cst_36 [0] : vector<128x128xf32> to vector<128xf32>
    %67 = vector.shape_cast %66 : vector<128xf32> to vector<1x128xf32>
    %68 = arith.addf %65, %67 : vector<1x128xf32>
    %c0_37 = arith.constant 0 : index
    %c0_38 = arith.constant 0 : index
    %c0_39 = arith.constant 0 : index
    %69 = vector.load %arg5[%c0_37, %c0_38, %c0_39] : memref<1x2x128xf32, #tpu.memory_space<vmem>>, vector<1x1x128xf32>
    %70 = vector.shape_cast %69 : vector<1x1x128xf32> to vector<1x128xf32>
    %71 = vector.shape_cast %68 : vector<1x128xf32> to vector<1x1x128xf32>
    tpu.vector_store %arg5[%c0_37, %c0_38, %c0_39], %71 {strides = array<i32>} : memref<1x2x128xf32, #tpu.memory_space<vmem>>, vector<1x1x128xf32>,
    %c0_40 = arith.constant 0 : index
    %c1_41 = arith.constant 1 : index
    %c0_42 = arith.constant 0 : index
    %72 = vector.load %arg5[%c0_40, %c1_41, %c0_42] : memref<1x2x128xf32, #tpu.memory_space<vmem>>, vector<1x1x128xf32>
    %73 = vector.shape_cast %72 : vector<1x1x128xf32> to vector<1x128xf32>
    %74 = arith.mulf %59, %59 : vector<128x128xf32>
    %cst_43 = arith.constant dense<0.000000e+00> : vector<128xf32>
    %75 = vector.multi_reduction <add>, %74, %cst_43 [0] : vector<128x128xf32> to vector<128xf32>
    %76 = vector.shape_cast %75 : vector<128xf32> to vector<1x128xf32>
    %77 = arith.addf %73, %76 : vector<1x128xf32>
    %c0_44 = arith.constant 0 : index
    %c1_45 = arith.constant 1 : index
    %c0_46 = arith.constant 0 : index
    %78 = vector.load %arg5[%c0_44, %c1_45, %c0_46] : memref<1x2x128xf32, #tpu.memory_space<vmem>>, vector<1x1x128xf32>
    %79 = vector.shape_cast %78 : vector<1x1x128xf32> to vector<1x128xf32>
    %80 = vector.shape_cast %77 : vector<1x128xf32> to vector<1x1x128xf32>
    tpu.vector_store %arg5[%c0_44, %c1_45, %c0_46], %80 {strides = array<i32>} : memref<1x2x128xf32, #tpu.memory_space<vmem>>, vector<1x1x128xf32>,
    return
  }
  func.func @transform_0(%arg0: i32, %arg1: i32) -> (i32, i32, i32, i32) {
    %c0_i32 = arith.constant 0 : i32
    %c0_i32_0 = arith.constant 0 : i32
    %c0_i32_1 = arith.constant 0 : i32
    %c0_i32_2 = arith.constant 0 : i32
    return %arg0, %c0_i32, %c0_i32_0, %c0_i32_1 : i32, i32, i32, i32
  }
  func.func @transform_1(%arg0: i32, %arg1: i32) -> (i32, i32, i32) {
    %c0_i32 = arith.constant 0 : i32
    %c0_i32_0 = arith.constant 0 : i32
    %c0_i32_1 = arith.constant 0 : i32
    %c0_i32_2 = arith.constant 0 : i32
    return %c0_i32, %c0_i32_0, %c0_i32_1 : i32, i32, i32
  }
  func.func @transform_2(%arg0: i32, %arg1: i32) -> (i32, i32) {
    %c2_i32 = arith.constant 2 : i32
    %0 = arith.muli %arg0, %c2_i32 : i32
    %1 = arith.addi %0, %arg1 : i32
    %c0_i32 = arith.constant 0 : i32
    %c0_i32_0 = arith.constant 0 : i32
    return %1, %c0_i32 : i32, i32
  }
  func.func @transform_3(%arg0: i32, %arg1: i32) -> (i32, i32, i32) {
    %c0_i32 = arith.constant 0 : i32
    %c0_i32_0 = arith.constant 0 : i32
    %c0_i32_1 = arith.constant 0 : i32
    return %arg0, %c0_i32, %c0_i32_0 : i32, i32, i32
  }
}

module attributes {stable_mosaic.version = 11 : i64} {
  func.func @_bn_apply_kernel(%arg0: i32, %arg1: memref<128x128xf32, #tpu.memory_space<vmem>>, %arg2: memref<1x128xf32, #tpu.memory_space<vmem>>, %arg3: memref<1x128xf32, #tpu.memory_space<vmem>>, %arg4: memref<128x128xf32, #tpu.memory_space<vmem>>) attributes {dimension_semantics = [#tpu.dimension_semantics<parallel>], iteration_bounds = array<i64: 4>, scalar_prefetch = 0 : i64, scratch_operands = 0 : i64, tpu.core_type = #tpu.core_type<tc>, window_params = [{transform_indices = @transform_0, window_bounds = array<i64: 128, 128>}, {pipeline_mode = #tpu.pipeline_mode<synchronous>, transform_indices = @transform_1, window_bounds = array<i64: 1, 128>}, {pipeline_mode = #tpu.pipeline_mode<synchronous>, transform_indices = @transform_2, window_bounds = array<i64: 1, 128>}, {transform_indices = @transform_3, window_bounds = array<i64: 128, 128>}]} {
    %c0 = arith.constant 0 : index
    %c0_0 = arith.constant 0 : index
    %0 = vector.load %arg1[%c0, %c0_0] : memref<128x128xf32, #tpu.memory_space<vmem>>, vector<128x128xf32>
    %c0_1 = arith.constant 0 : index
    %c0_2 = arith.constant 0 : index
    %1 = vector.load %arg2[%c0_1, %c0_2] : memref<1x128xf32, #tpu.memory_space<vmem>>, vector<1x128xf32>
    %2 = vector.broadcast %1 : vector<1x128xf32> to vector<128x128xf32>
    %3 = arith.mulf %0, %2 : vector<128x128xf32>
    %c0_3 = arith.constant 0 : index
    %c0_4 = arith.constant 0 : index
    %4 = vector.load %arg3[%c0_3, %c0_4] : memref<1x128xf32, #tpu.memory_space<vmem>>, vector<1x128xf32>
    %5 = vector.broadcast %4 : vector<1x128xf32> to vector<128x128xf32>
    %6 = arith.addf %3, %5 : vector<128x128xf32>
    %cst = arith.constant 0.000000e+00 : f32
    %7 = vector.broadcast %cst : f32 to vector<128x128xf32>
    %8 = arith.maximumf %6, %7 : vector<128x128xf32>
    %c0_5 = arith.constant 0 : index
    %c0_6 = arith.constant 0 : index
    %9 = vector.load %arg4[%c0_5, %c0_6] : memref<128x128xf32, #tpu.memory_space<vmem>>, vector<128x128xf32>
    tpu.vector_store %arg4[%c0_5, %c0_6], %8 {strides = array<i32>} : memref<128x128xf32, #tpu.memory_space<vmem>>, vector<128x128xf32>,
    return
  }
  func.func @transform_0(%arg0: i32) -> (i32, i32) {
    %c0_i32 = arith.constant 0 : i32
    %c0_i32_0 = arith.constant 0 : i32
    return %arg0, %c0_i32 : i32, i32
  }
  func.func @transform_1(%arg0: i32) -> (i32, i32) {
    %c0_i32 = arith.constant 0 : i32
    %c0_i32_0 = arith.constant 0 : i32
    %c0_i32_1 = arith.constant 0 : i32
    return %c0_i32, %c0_i32_0 : i32, i32
  }
  func.func @transform_2(%arg0: i32) -> (i32, i32) {
    %c0_i32 = arith.constant 0 : i32
    %c0_i32_0 = arith.constant 0 : i32
    %c0_i32_1 = arith.constant 0 : i32
    return %c0_i32, %c0_i32_0 : i32, i32
  }
  func.func @transform_3(%arg0: i32) -> (i32, i32) {
    %c0_i32 = arith.constant 0 : i32
    %c0_i32_0 = arith.constant 0 : i32
    return %arg0, %c0_i32 : i32, i32
  }
}

</mosaic_0001>

<bundles_post_ra>
// kernel: conv_bn.3
= control target key start
LH: loop header
LB: loop body
LE: loop exit
PB: predicated region body
PF: predicated region fallthrough
CT: control target
= control target key end

     0   :  { %s367_s12 = smov 0   ;;  %s444_s0 = inlined_call_operand.vmem [shape: f32[512,128], index: 0, kind: input, shape index: {}]   ;;  %s445_s1 = inlined_call_operand.vmem [shape: f32[1,128], index: 1, kind: input, shape index: {}]   ;;  %s446_s2 = inlined_call_operand.vmem [shape: f32[1,128], index: 2, kind: input, shape index: {}]   ;;  %s447_s3 = inlined_call_operand.vmem [shape: f32[512,128], index: 3, kind: output, shape index: {}]  }
   0x1 LB: > { %s318_s13 = sadd.s32 4294967295, %s345_s12   ;;  %p322_p0 = scmp.ge.s32.totalorder %s345_s12, 1  ;;  %s345_s12 = sphi %s367_s12, %s13_s12  }
   0x2   : > { %p138_p1 = scmp.lt.s32.totalorder %s345_s12, 5 }
   0x4   : > { %p139_p2 = pnand %p322_p0, %p138_p1 }
   0x5   : > { %s323_s14 = sshll.u32 (!%p139_p2), %s318_s13, 4 }
   0x6   : > { %142 = sbr.rel (%p139_p2) target bundleno = 37 (0x25), region = 32  ;;  %p163_p3 = scmp.lt.s32.totalorder (!%p139_p2), %s323_s14, 63 }
   0xb   : > { %s449_s14 = smov (!%p163_p3, %s323_s14), 63  ;;  %v337_v0 = vld [vmem:[%s445_s1] ss:$0 sm:$0xff] }
   0xc   : > { %s324_s17 = sshll.u32 %s449_s14, 3  ;;  %v386_v1 = vld [vmem:[%s446_s2] ss:$0 sm:$0xff] }
   0xd   : > { %s381_s20 = scalar_lea.vmem %s444_s0, %s324_s17  ;;  %s402_s25 = scalar_lea.vmem %s447_s3, %s324_s17 }
   0xe   : > { %v174_v2 = vld [vmem:[%s381_s20] sm:$0xff]  ;;  %v175_v3 = vld [vmem:[%s381_s20 + $0x8] sm:$0xff]  ;;  %v176_v4 = vld [vmem:[%s381_s20 + $0x10] sm:$0xff] }
   0xf   : > { %v194_v5 = vmul.f32 %v337_v0, %v174_v2  ;;  %v195_v6 = vmul.f32 %v337_v0, %v175_v3  ;;  %v196_v7 = vmul.f32 %v337_v0, %v176_v4  ;;  %v177_v8 = vld [vmem:[%s381_s20 + $0x18] sm:$0xff]  ;;  %v178_v9 = vld [vmem:[%s381_s20 + $0x20] sm:$0xff]  ;;  %v179_v10 = vld [vmem:[%s381_s20 + $0x28] sm:$0xff] }
  0x10   : > { %v197_v11 = vmul.f32 %v337_v0, %v177_v8  ;;  %v198_v12 = vmul.f32 %v337_v0, %v178_v9  ;;  %v199_v13 = vmul.f32 %v337_v0, %v179_v10  ;;  %v180_v14 = vld [vmem:[%s381_s20 + $0x30] sm:$0xff]  ;;  %v181_v15 = vld [vmem:[%s381_s20 + $0x38] sm:$0xff]  ;;  %v182_v24 = vld [vmem:[%s381_s20 + $0x40] sm:$0xff] }
  0x11   : > { %v214_v16 = vadd.f32 %v386_v1, %v194_v5  ;;  %v215_v17 = vadd.f32 %v386_v1, %v195_v6  ;;  %v216_v18 = vadd.f32 %v386_v1, %v196_v7  ;;  %v200_v19 = vmul.f32 %v337_v0, %v180_v14  ;;  %v183_v25 = vld [vmem:[%s381_s20 + $0x48] sm:$0xff]  ;;  %v184_v26 = vld [vmem:[%s381_s20 + $0x50] sm:$0xff]  ;;  %v185_v31 = vld [vmem:[%s381_s20 + $0x58] sm:$0xff] }
  0x12   : > { %v217_v20 = vadd.f32 %v386_v1, %v197_v11  ;;  %v218_v21 = vadd.f32 %v386_v1, %v198_v12  ;;  %v219_v22 = vadd.f32 %v386_v1, %v199_v13  ;;  %v201_v23 = vmul.f32 %v337_v0, %v181_v15  ;;  %v186_v32 = vld [vmem:[%s381_s20 + $0x60] sm:$0xff]  ;;  %v187_v33 = vld [vmem:[%s381_s20 + $0x68] sm:$0xff]  ;;  %v188_v37 = vld [vmem:[%s381_s20 + $0x70] sm:$0xff] }
  0x13   : > { %v230_v27 = vmax.f32 %v214_v16, 0.0  ;;  %v231_v28 = vmax.f32 %v215_v17, 0.0  ;;  %v232_v29 = vmax.f32 %v216_v18, 0.0  ;;  %v220_v30 = vadd.f32 %v386_v1, %v200_v19  ;;  %v189_v42 = vld [vmem:[%s381_s20 + $0x78] sm:$0xff] }
  0x14   : > { %v233_v34 = vmax.f32 %v217_v20, 0.0  ;;  %v234_v35 = vmax.f32 %v218_v21, 0.0  ;;  %v221_v36 = vadd.f32 %v386_v1, %v201_v23  ;;  %v235_v38 = vmax.f32 %v219_v22, 0.0 }
  0x15   : > { %246 = vst [vmem:[%s402_s25] sm:$0xff] %v230_v27  ;;  %v202_v39 = vmul.f32 %v337_v0, %v182_v24  ;;  %v203_v40 = vmul.f32 %v337_v0, %v183_v25  ;;  %v204_v41 = vmul.f32 %v337_v0, %v184_v26  ;;  %v236_v43 = vmax.f32 %v220_v30, 0.0 }
  0x16   : > { %247 = vst [vmem:[%s402_s25 + $0x8] sm:$0xff] %v231_v28  ;;  %v205_v44 = vmul.f32 %v337_v0, %v185_v31  ;;  %v206_v45 = vmul.f32 %v337_v0, %v186_v32  ;;  %v207_v46 = vmul.f32 %v337_v0, %v187_v33  ;;  %v208_v50 = vmul.f32 %v337_v0, %v188_v37 }
  0x17   : > { %248 = vst [vmem:[%s402_s25 + $0x10] sm:$0xff] %v232_v29  ;;  %v222_v47 = vadd.f32 %v386_v1, %v202_v39  ;;  %v223_v48 = vadd.f32 %v386_v1, %v203_v40  ;;  %v224_v49 = vadd.f32 %v386_v1, %v204_v41  ;;  %v237_v51 = vmax.f32 %v221_v36, 0.0 }
  0x18   : > { %249 = vst [vmem:[%s402_s25 + $0x18] sm:$0xff] %v233_v34  ;;  %v225_v52 = vadd.f32 %v386_v1, %v205_v44  ;;  %v209_v53 = vmul.f32 %v337_v0, %v189_v42  ;;  %v226_v55 = vadd.f32 %v386_v1, %v206_v45  ;;  %v227_v57 = vadd.f32 %v386_v1, %v207_v46 }
  0x19   : > { %250 = vst [vmem:[%s402_s25 + $0x20] sm:$0xff] %v234_v35  ;;  %v238_v54 = vmax.f32 %v222_v47, 0.0  ;;  %v239_v56 = vmax.f32 %v223_v48, 0.0  ;;  %v240_v58 = vmax.f32 %v224_v49, 0.0  ;;  %v228_v59 = vadd.f32 %v386_v1, %v208_v50 }
  0x1a   : > { %251 = vst [vmem:[%s402_s25 + $0x28] sm:$0xff] %v235_v38  ;;  %v241_v60 = vmax.f32 %v225_v52, 0.0  ;;  %v229_v61 = vadd.f32 %v386_v1, %v209_v53  ;;  %v242_v62 = vmax.f32 %v226_v55, 0.0  ;;  %v243_v63 = vmax.f32 %v227_v57, 0.0 }
  0x1b   : > { %252 = vst [vmem:[%s402_s25 + $0x30] sm:$0xff] %v236_v43  ;;  %v244_v0 = vmax.f32 %v228_v59, 0.0 }
  0x1c   : > { %253 = vst [vmem:[%s402_s25 + $0x38] sm:$0xff] %v237_v51  ;;  %v245_v2 = vmax.f32 %v229_v61, 0.0 }
  0x1d   : > { %254 = vst [vmem:[%s402_s25 + $0x40] sm:$0xff] %v238_v54 }
  0x1e   : > { %255 = vst [vmem:[%s402_s25 + $0x48] sm:$0xff] %v239_v56 }
  0x1f   : > { %256 = vst [vmem:[%s402_s25 + $0x50] sm:$0xff] %v240_v58 }
  0x20   : > { %257 = vst [vmem:[%s402_s25 + $0x58] sm:$0xff] %v241_v60 }
  0x21   : > { %258 = vst [vmem:[%s402_s25 + $0x60] sm:$0xff] %v242_v62 }
  0x22   : > { %259 = vst [vmem:[%s402_s25 + $0x68] sm:$0xff] %v243_v63 }
  0x23   : > { %260 = vst [vmem:[%s402_s25 + $0x70] sm:$0xff] %v244_v0 }
  0x24   : > { %261 = vst [vmem:[%s402_s25 + $0x78] sm:$0xff] %v245_v2 }
  0x25 PF: > { %s13_s12 = sadd.s32 1, %s345_s12  }
  0x26   : > { %p10_p4 = scmp.ge.s32.totalorder %s13_s12, 6  }
  0x28   :  { %12 = sbr.rel (!%p10_p4) target bundleno = 1 (0x1), region = 62 }

// kernel: conv_bn.2
= control target key start
LH: loop header
LB: loop body
LE: loop exit
PB: predicated region body
PF: predicated region fallthrough
CT: control target
= control target key end

     0   :  { %s1822_s12 = smov 0   ;;  %s1824_s13 = smov 0   ;;  %s2554_s0 = inlined_call_operand.vmem [shape: bf16[2,18,18,4], index: 0, kind: input, shape index: {}]   ;;  %s2555_s1 = inlined_call_operand.vmem [shape: bf16[9,4,128], index: 1, kind: input, shape index: {}]   ;;  %s2556_s2 = inlined_call_operand.vmem [shape: f32[512,128], index: 2, kind: output, shape index: {0}]   ;;  %s2557_s3 = inlined_call_operand.vmem [shape: f32[2,2,128], index: 3, kind: output, shape index: {1}]  }
   0x1   :  { %s1826_s14 = smov 0   ;;  %s1828_s15 = smov 0  }
   0x2   :  { %s1830_s16 = smov 0  }
   0x3 LB: > { %s23_s17 = sadd.s32 1, %s1791_s14  ;;  %s26_s18 = sadd.s32 1, %s1795_s15  ;;  %s1799_s16 = sphi %s1830_s16, %s14_s16   ;;  %s1795_s15 = sphi %s1828_s15, %s2565_s15   ;;  %s1791_s14 = sphi %s1826_s14, %s2564_s14   ;;  %s1787_s13 = sphi %s1824_s13, %s2563_s13   ;;  %s1783_s12 = sphi %s1822_s12, %s2562_s12  }
   0x4   : > { %p24_p0 = scmp.ge.s32.totalorder %s23_s17, 2  ;;  %p1563_p1 = scmp.ge.s32.totalorder %s1799_s16, 1 }
   0x5   : > { %p156_p2 = scmp.lt.s32.totalorder %s1799_s16, 5 }
   0x6   : > { %s2567_s17 = smov (%p24_p0, %s23_s17), 0  ;;  %s2569_s18 = smov (!%p24_p0, %s26_s18), %s1795_s15 }
   0x7   : > { %p157_p3 = pnand %p1563_p1, %p156_p2  ;;  %p28_p4 = scmp.ge.s32.totalorder %s2569_s18, 2 }
   0x8   : > { %p186_p5 = scmp.lt.s32.totalorder (!%p157_p3), %s1787_s13, 1  ;;  %s1705_s24 = smul.u32 (!%p157_p3), 96, %s1783_s12 }
   0x9   : > { %s2571_s18 = smov (%p28_p4, %s2569_s18), 0  ;;  %160 = sbr.rel (%p157_p3) target bundleno = 512 (0x200), region = 28 }
   0xa   : > { %s1565_s28 = sshll.u32 (!%p157_p3), %s1787_s13, 1  ;;  %p1702_p7 = scmp.ne.s32.totalorder (!%p157_p3), %s1783_s12, 0 }
   0xb   : > { %s192_s29 = sadd.s32 (!%p157_p3), %s1783_s12, %s1565_s28 }
   0xc   : > { %s1566_s30 = sshll.u32 (!%p157_p3), %s192_s29, 4 }
   0xd   : > { %p194_p6 = scmp.lt.s32.totalorder (!%p157_p3), %s1566_s30, 63 }
   0xe   : > { %v1572_v0 = vld [vmem:[%s2555_s1 + $0x2] sm:$0x3]  ;;  %vm487_vm0 = vcmask 1041408   ;;  %s187_s21 = scalar_select %p186_p5, %s1787_s13, 1  ;;  %v1629_v2 = vld [vmem:[%s2555_s1 + $0x4] sm:$0x3] }
   0xf   : > { %v489_v1 = vsel %vm487_vm0, %v1572_v0, 0  ;;  %v774_v3 = vsel %vm487_vm0, %v1629_v2, 0  ;;  %v1638_v4 = vld [vmem:[%s2555_s1 + $0x6] sm:$0x3]  ;;  %v240_v5 = vld [vmem:[%s2555_s1] sm:$0x3] }
  0x10   : > { %1716 = vmatpush.bf16.msra.mxu1 %v489_v1  ;;  %1717 = vmatpush.bf16.msra.mxu2 %v489_v1  ;;  %s1719_s25 = smul.u32 216, %s187_s21  ;;  %s1568_s26 = sshll.u32 %s187_s21, 1  ;;  %v852_v6 = vsel %vm487_vm0, %v1638_v4, 0  ;;  %v605_v7 = vsel %vm487_vm0, %v240_v5, 0  ;;  %v1651_v8 = vld [vmem:[%s2555_s1 + $0x8] sm:$0x3] }
  0x11   : > { %1718 = vmatpush.bf16.msra.mxu3 %v489_v1  ;;  %498 = vmatpush.bf16.msra.mxu0 %v489_v1  ;;  %s1876_s6 = scalar_lea.vmem %s2557_s3, %s1568_s26  ;;  %v952_v9 = vsel %vm487_vm0, %v1651_v8, 0  ;;  %vm241_vm1 = vsmask.f32 3328  ;;  %vm242_vm2 = vsmask.f32 7440  ;;  %vm462_vm3 = vcmask 31744  }
  0x12   : > { %s190_s11 = scalar_lea.vmem %s2554_s0, %s1719_s25  ;;  %vm1925_vm4 = vmor %vm241_vm1, %vm242_vm2  ;;  %vm664_vm5 = vcmask 1042432   ;;  %vm665_vm6 = vcmask 1046532   ;;  %s2573_s30 = smov (!%p194_p6, %s1566_s30), 63 }
  0x13   : > { %s1887_s19 = scalar_lea.vmem %s190_s11, %s1705_s24  ;;  %vm2079_vm7 = vmor %vm664_vm5, %vm665_vm6  ;;  %s1567_s13 = sshll.u32 %s2573_s30, 3 }
  0x14   : > { %783 = vmatpush.bf16.msrb.mxu2 %v774_v3  ;;  %614 = vmatpush.bf16.msrb.mxu1 %v605_v7  ;;  %v1890_v10 = vld [vmem:[%s1887_s19 + $0x18] sm:$0xf]  ;;  %v1893_v11 = vld [vmem:[%s1887_s19 + $0x1c] sm:$0xf]  ;;  %v1896_v12 = vld [vmem:[%s1887_s19 + $0x20] sm:$0x1]  ;;  %s2422_s7 = scalar_lea.vmem %s2556_s2, %s1567_s13 }
  0x15   : > { %861 = vmatpush.bf16.msrb.mxu3 %v852_v6  ;;  %961 = vmatpush.bf16.msrb.mxu0 %v952_v9  ;;  %v293_v13 = vshrl.u32 %v1890_v10, 16  ;;  %v296_v14 = vshll.u32 %v1890_v10, 16  ;;  %v302_v15 = vshll.u32 %v1893_v11, 16  ;;  %v306_v16 = vshrl.u32 %v1893_v11, 16  ;;  %v1903_v17 = vld [vmem:[%s1887_s19 + $0x30] sm:$0xf] }
  0x16   : > { %v312_v18 = vshll.u32 %v1896_v12, 16  ;;  %v1907_v19 = vld [vmem:[%s1887_s19 + $0x34] sm:$0xf]  ;;  %v1910_v20 = vld [vmem:[%s1887_s19 + $0x38] sm:$0x1]  ;;  %v341_v21 = vshrl.u32 %v1903_v17, 16 }
  0x17   : > { %v295_v22 = vrot.slane %v293_v13, 4  ;;  %v298_v23 = vrot.slane %v296_v14, 5  ;;  %v304_v24 = vrot.slane %v302_v15, 5  ;;  %v308_v25 = vrot.slane %v306_v16, 4  ;;  %v1914_v26 = vld [vmem:[%s1887_s19 + $0x48] sm:$0xf] }
  0x18   : > { %v314_v27 = vrot.slane %v312_v18, 5  ;;  %v343_v28 = vrot.slane %v341_v21, 4  ;;  %v344_v29 = vshll.u32 %v1903_v17, 16  ;;  %v350_v30 = vshll.u32 %v1907_v19, 16  ;;  %v1921_v35 = vld [vmem:[%s1887_s19 + $0x4c] sm:$0xf] }
  0x19   : > { %v299_v31 = vor.u32 %v298_v23, %v295_v22  ;;  %v309_v32 = vor.u32 %v308_v25, %v304_v24  ;;  %v354_v33 = vshrl.u32 %v1907_v19, 16  ;;  %v360_v34 = vshll.u32 %v1910_v20, 16  ;;  %v1932_v46 = vld [vmem:[%s1887_s19 + $0x50] sm:$0x1]  ;;  %v1941_v54 = vld [vmem:[%s1887_s19] sm:$0xf] }
  0x1a   : > { %v346_v37 = vrot.slane %v344_v29, 5  ;;  %v352_v38 = vrot.slane %v350_v30, 5  ;;  %v389_v39 = vshrl.u32 %v1914_v26, 16  ;;  %v392_v40 = vshll.u32 %v1914_v26, 16  ;;  %v1949_v2 = vld [vmem:[%s1887_s19 + $0x4] sm:$0xf] }
  0x1b   : > { %v300_v41 = vrot.slane %v299_v31, 4  ;;  %v310_v42 = vrot.slane %v309_v32, 4  ;;  %v356_v43 = vrot.slane %v354_v33, 4  ;;  %v362_v44 = vrot.slane %v360_v34, 5  ;;  %v1955_v8 = vld [vmem:[%s1887_s19 + $0x8] sm:$0x1] }
  0x1c   : > { %v347_v45 = vor.u32 %v346_v37, %v343_v28  ;;  %v391_v47 = vrot.slane %v389_v39, 4  ;;  %v394_v48 = vrot.slane %v392_v40, 5  ;;  %v398_v49 = vshll.u32 %v1921_v35, 16  ;;  %v1963_v16 = vld [vmem:[%s1887_s19 + $0x24] sm:$0xf] }
  0x1d   : > { %v305_v50 = vsel %vm1925_vm4, %v300_v41, %v304_v24  ;;  %v315_v51 = vsel %vm1925_vm4, %v310_v42, %v314_v27  ;;  %v357_v52 = vor.u32 %v356_v43, %v352_v38  ;;  %v402_v53 = vshrl.u32 %v1921_v35, 16  ;;  %v1972_v29 = vld [vmem:[%s1887_s19 + $0x28] sm:$0xf]  ;;  %v1977_v33 = vld [vmem:[%s1887_s19 + $0x2c] sm:$0x1] }
  0x1e   : > { %v442_v55 = vunpack.c.l.b16 %v305_v50  ;;  %v443_v56 = vunpack.c.l.b16 %v315_v51  ;;  %v348_v57 = vrot.slane %v347_v45, 4  ;;  %v395_v58 = vor.u32 %v394_v48, %v391_v47  ;;  %v1984_v41 = vld [vmem:[%s1887_s19 + $0x3c] sm:$0xf] }
  0x1f   : > { %v358_v59 = vrot.slane %v357_v52, 4  ;;  %v400_v60 = vrot.slane %v398_v49, 5  ;;  %v404_v61 = vrot.slane %v402_v53, 4  ;;  %v408_v62 = vshll.u32 %v1932_v46, 16 }
  0x20   : > { %v1944_v63 = vpack.c.b16 %v443_v56, %v442_v55  ;;  %v353_v0 = vsel %vm1925_vm4, %v348_v57, %v352_v38  ;;  %v396_v1 = vrot.slane %v395_v58, 4  ;;  %v245_v3 = vshrl.u32 %v1941_v54, 16  ;;  %v1992_v55 = vld [vmem:[%s1887_s19 + $0x40] sm:$0xf] }
  0x21   : > { %v363_v4 = vsel %vm1925_vm4, %v358_v59, %v362_v44  ;;  %v446_v5 = vunpack.c.l.b16 %v353_v0  ;;  %v405_v6 = vor.u32 %v404_v61, %v400_v60  ;;  %v410_v7 = vrot.slane %v408_v62, 5  ;;  %v2004_v62 = vld [vmem:[%s1887_s19 + $0x54] sm:$0xf] }
  0x22   : > { %1575 = vmatmul.msk.bf16.vlgmr.msra.gmra.mxu1 %vm462_vm3, %v1944_v63  ;;  %v447_v9 = vunpack.c.l.b16 %v363_v4  ;;  %v401_v13 = vsel %vm1925_vm4, %v396_v1, %v400_v60  ;;  %v247_v14 = vrot.slane %v245_v3, 4  ;;  %v248_v15 = vshll.u32 %v1941_v54, 16  ;;  %v2000_v60 = vld [vmem:[%s1887_s19 + $0x44] sm:$0x1] }
  0x23   : > { %v406_v18 = vrot.slane %v405_v6, 4  ;;  %v450_v21 = vunpack.c.l.b16 %v401_v13  ;;  %v254_v22 = vshll.u32 %v1949_v2, 16  ;;  %v258_v23 = vshrl.u32 %v1949_v2, 16 }
  0x24   : > { %v1967_v24 = vpack.c.b16 %v447_v9, %v446_v5  ;;  %v250_v25 = vrot.slane %v248_v15, 5  ;;  %v264_v27 = vshll.u32 %v1955_v8, 16  ;;  %v672_v28 = vrot.slane %v1955_v8, 5 }
  0x25   : > { %v411_v30 = vsel %vm1925_vm4, %v406_v18, %v410_v7  ;;  %v256_v31 = vrot.slane %v254_v22, 5  ;;  %v260_v32 = vrot.slane %v258_v23, 4  ;;  %v317_v34 = vshrl.u32 %v1963_v16, 16 }
  0x26   : > { %1577 = vmatmul.msk.bf16.vlgmr.msra.gmra.mxu2 %vm462_vm3, %v1967_v24  ;;  %v451_v37 = vunpack.c.l.b16 %v411_v30  ;;  %v251_v38 = vor.u32 %v250_v25, %v247_v14  ;;  %v266_v39 = vrot.slane %v264_v27, 5  ;;  %v320_v40 = vshll.u32 %v1963_v16, 16  ;;  %v2015_v27 = vld [vmem:[%s1887_s19 + $0x58] sm:$0xf]  ;;  %v2018_v30 = vld [vmem:[%s1887_s19 + $0x5c] sm:$0x1] }
  0x27   : > { %v261_v42 = vor.u32 %v260_v32, %v256_v31  ;;  %v319_v43 = vrot.slane %v317_v34, 4  ;;  %v326_v44 = vshll.u32 %v1972_v29, 16  ;;  %v330_v45 = vshrl.u32 %v1972_v29, 16 }
  0x28   : > { %v1988_v47 = vpack.c.b16 %v451_v37, %v450_v21  ;;  %v252_v48 = vrot.slane %v251_v38, 4  ;;  %v322_v49 = vrot.slane %v320_v40, 5  ;;  %v336_v50 = vshll.u32 %v1977_v33, 16  ;;  %v2023_v38 = vld [vmem:[%s1887_s19 + $0xc] sm:$0xf] }
  0x29   : > { %v262_v51 = vrot.slane %v261_v42, 4  ;;  %v328_v52 = vrot.slane %v326_v44, 5  ;;  %v332_v53 = vrot.slane %v330_v45, 4  ;;  %v365_v56 = vshrl.u32 %v1984_v41, 16 }
  0x2a   : > { %1579 = vmatmul.msk.bf16.vlgmr.msra.gmra.mxu3 %vm462_vm3, %v1988_v47  ;;  %v257_v57 = vsel %vm1925_vm4, %v252_v48, %v256_v31  ;;  %v323_v58 = vor.u32 %v322_v49, %v319_v43  ;;  %v338_v59 = vrot.slane %v336_v50, 5  ;;  %v368_v61 = vshll.u32 %v1984_v41, 16 }
  0x2b   : > { %v267_v0 = vsel %vm1925_vm4, %v262_v51, %v266_v39  ;;  %v438_v1 = vunpack.c.l.b16 %v257_v57  ;;  %v333_v3 = vor.u32 %v332_v53, %v328_v52  ;;  %v367_v4 = vrot.slane %v365_v56, 4  ;;  %v2035_v53 = vld [vmem:[%s1887_s19 + $0x10] sm:$0xf] }
  0x2c   : > { %v439_v5 = vunpack.c.l.b16 %v267_v0  ;;  %v324_v6 = vrot.slane %v323_v58, 4  ;;  %v370_v7 = vrot.slane %v368_v61, 5  ;;  %v374_v9 = vshll.u32 %v1992_v55, 16  ;;  %v2039_v0 = vld [vmem:[%s1887_s19 + $0x14] sm:$0x1] }
  0x2d   : > { %v334_v13 = vrot.slane %v333_v3, 4  ;;  %v378_v14 = vshrl.u32 %v1992_v55, 16  ;;  %v384_v15 = vshll.u32 %v2000_v60, 16  ;;  %v413_v18 = vshrl.u32 %v2004_v62, 16 }
  0x2e   : > { %v454_v21 = vpack.c.b16 %v439_v5, %v438_v1  ;;  %v329_v22 = vsel %vm1925_vm4, %v324_v6, %v328_v52  ;;  %v371_v23 = vor.u32 %v370_v7, %v367_v4  ;;  %v376_v25 = vrot.slane %v374_v9, 5 }
  0x2f   : > { %v339_v31 = vsel %vm1925_vm4, %v334_v13, %v338_v59  ;;  %v444_v32 = vunpack.c.l.b16 %v329_v22  ;;  %v380_v34 = vrot.slane %v378_v14, 4  ;;  %v386_v37 = vrot.slane %v384_v15, 5 }
  0x30   : > { %1573 = vmatmul.msk.bf16.vlgmr.msra.gmra.mxu0 %vm462_vm3, %v454_v21  ;;  %v445_v39 = vunpack.c.l.b16 %v339_v31  ;;  %v372_v40 = vrot.slane %v371_v23, 4  ;;  %v415_v42 = vrot.slane %v413_v18, 4  ;;  %v416_v43 = vshll.u32 %v2004_v62, 16  ;;  %v1670_v31 = vld [vmem:[%s2555_s1 + $0xc] sm:$0x3] }
  0x31   : > { %v381_v44 = vor.u32 %v380_v34, %v376_v25  ;;  %v422_v45 = vshll.u32 %v2015_v27, 16  ;;  %v426_v48 = vshrl.u32 %v2015_v27, 16  ;;  %v432_v49 = vshll.u32 %v2018_v30, 16 }
  0x32   : > { %v2030_v50 = vpack.c.b16 %v445_v39, %v444_v32  ;;  %v377_v51 = vsel %vm1925_vm4, %v372_v40, %v376_v25  ;;  %v418_v52 = vrot.slane %v416_v43, 5  ;;  %v269_v56 = vshrl.u32 %v2023_v38, 16  ;;  %v1683_v40 = vld [vmem:[%s2555_s1 + $0xe] sm:$0x3] }
  0x33   : > { %v382_v57 = vrot.slane %v381_v44, 4  ;;  %v448_v58 = vunpack.c.l.b16 %v377_v51  ;;  %v424_v59 = vrot.slane %v422_v45, 5  ;;  %v428_v61 = vrot.slane %v426_v48, 4 }
  0x34   : > { %1576 = vmatmul.msk.bf16.gmra.mxu1 %vm462_vm3, %v2030_v50  ;;  %v419_v1 = vor.u32 %v418_v52, %v415_v42  ;;  %v434_v3 = vrot.slane %v432_v49, 5  ;;  %v271_v4 = vrot.slane %v269_v56, 4  ;;  %v272_v5 = vshll.u32 %v2023_v38, 16  ;;  %v1661_v42 = vld [vmem:[%s2555_s1 + $0xa] sm:$0x3] }
  0x35   : > { %v387_v6 = vsel %vm1925_vm4, %v382_v57, %v386_v37  ;;  %v429_v7 = vor.u32 %v428_v61, %v424_v59  ;;  %v278_v9 = vshll.u32 %v2035_v53, 16  ;;  %v282_v13 = vshrl.u32 %v2035_v53, 16  ;;  %v1693_v56 = vld [vmem:[%s2555_s1 + $0x10] sm:$0x3] }
  0x36   : > { %v449_v14 = vunpack.c.l.b16 %v387_v6  ;;  %v420_v15 = vrot.slane %v419_v1, 4  ;;  %v274_v18 = vrot.slane %v272_v5, 5  ;;  %v288_v21 = vshll.u32 %v2039_v0, 16 }
  0x37   : > { %v430_v22 = vrot.slane %v429_v7, 4  ;;  %v280_v23 = vrot.slane %v278_v9, 5  ;;  %v284_v25 = vrot.slane %v282_v13, 4  ;;  %v1621_v51 = vrot.slane %v1941_v54, 9 }
  0x38   : > { %v2052_v32 = vpack.c.b16 %v449_v14, %v448_v58  ;;  %v425_v34 = vsel %vm1925_vm4, %v420_v15, %v424_v59  ;;  %v275_v37 = vor.u32 %v274_v18, %v271_v4  ;;  %v290_v39 = vrot.slane %v288_v21, 5  ;;  %v1706_v15 = vld [vmem:[%s1887_s19] sm:$0xff] }
  0x39   : > { %v435_v43 = vsel %vm1925_vm4, %v430_v22, %v434_v3  ;;  %v452_v44 = vunpack.c.l.b16 %v425_v34  ;;  %v285_v45 = vor.u32 %v284_v25, %v280_v23  ;;  %v669_v52 = vrot.slane %v1949_v2, 5 }
  0x3a   : > { %1578 = vmatmul.msk.bf16.gmra.mxu2 %vm462_vm3, %v2052_v32  ;;  %v453_v48 = vunpack.c.l.b16 %v435_v43  ;;  %v276_v49 = vrot.slane %v275_v37, 4  ;;  %v1114_v58 = vsel %vm487_vm0, %v1670_v31, 0  ;;  %v1214_v59 = vsel %vm487_vm0, %v1683_v40, 0 }
  0x3b   : > { %v286_v57 = vrot.slane %v285_v45, 4  ;;  %v1036_v61 = vsel %vm487_vm0, %v1661_v42, 0  ;;  %v671_v2 = vrot.slane %v669_v52, 4  ;;  %1123 = vmatpush.bf16.msra.mxu2 %v1114_v58  ;;  %1223 = vmatpush.bf16.msra.mxu3 %v1214_v59  ;;  %v1298_v6 = vsel %vm487_vm0, %v1693_v56, 0  ;;  %v1707_v42 = vld [vmem:[%s1887_s19 + $0xc] sm:$0xff] }
  0x3c   : > { %v2074_v1 = vpack.c.b16 %v453_v48, %v452_v44  ;;  %v281_v3 = vsel %vm1925_vm4, %v276_v49, %v280_v23  ;;  %1045 = vmatpush.bf16.msra.mxu1 %v1036_v61  ;;  %1307 = vmatpush.bf16.msra.mxu0 %v1298_v6  ;;  %v670_v9 = vsel %vm2079_vm7, %v1621_v51, %v669_v52  ;;  %v1623_v22 = vrot.slane %v1890_v10, 9 }
  0x3d   : > { %v291_v4 = vsel %vm1925_vm4, %v286_v57, %v290_v39  ;;  %v440_v5 = vunpack.c.l.b16 %v281_v3  ;;  %v673_v13 = vsel %vm2079_vm7, %v671_v2, %v672_v28  ;;  %v725_v18 = vunpack.c.l.b16 %v670_v9  ;;  %v2155_v3 = vld [vmem:[%s1887_s19 + $0x30] sm:$0xff] }
  0x3e   : > { %1580 = vmatmul.msk.bf16.gmra.mxu3 %vm462_vm3, %v2074_v1  ;;  %v441_v7 = vunpack.c.l.b16 %v291_v4  ;;  %v726_v21 = vunpack.c.l.b16 %v673_v13  ;;  %v683_v23 = vrot.slane %v1893_v11, 5  ;;  %v686_v25 = vrot.slane %v1896_v12, 5  ;;  %v2175_v13 = vld [vmem:[%s1887_s19 + $0x3c] sm:$0xff] }
  0x3f   : > { %v676_v34 = vrot.slane %v2035_v53, 5  ;;  %v1622_v10 = vrot.slane %v2023_v38, 9  ;;  %v679_v12 = vrot.slane %v2039_v0, 5  ;;  %v1624_v38 = vrot.slane %v1963_v16, 9  ;;  %v2130_v16 = vld [vmem:[%s1887_s19 + $0x18] sm:$0xff] }
  0x40   : > { %v455_v14 = vpack.c.b16 %v441_v7, %v440_v5  ;;  %v741_v31 = vpack.c.b16 %v726_v21, %v725_v18  ;;  %v684_v8 = vsel %vm2079_vm7, %v1623_v22, %v683_v23  ;;  %v685_v28 = vrot.slane %v683_v23, 4 }
  0x41   : > { %v729_v37 = vunpack.c.l.b16 %v684_v8  ;;  %v678_v11 = vrot.slane %v676_v34, 4  ;;  %v677_v53 = vsel %vm2079_vm7, %v1622_v10, %v676_v34  ;;  %v690_v0 = vrot.slane %v1972_v29, 5 }
  0x42   : > { %1574 = vmatmul.msk.bf16.gmra.mxu0 %vm462_vm3, %v455_v14  ;;  %v687_v39 = vsel %vm2079_vm7, %v685_v28, %v686_v25  ;;  %v727_v45 = vunpack.c.l.b16 %v677_v53  ;;  %v693_v49 = vrot.slane %v1977_v33, 5  ;;  %v2143_v33 = vld [vmem:[%s1887_s19 + $0x24] sm:$0xff]  ;;  %v697_v61 = vrot.slane %v1907_v19, 5 }
  0x43   : > { %v730_v40 = vunpack.c.l.b16 %v687_v39  ;;  %v680_v44 = vsel %vm2079_vm7, %v678_v11, %v679_v12  ;;  %v691_v52 = vsel %vm2079_vm7, %v1624_v38, %v690_v0  ;;  %v692_v56 = vrot.slane %v690_v0, 4  ;;  %v2195_v25 = vld [vmem:[%s1887_s19 + $0x48] sm:$0xff]  ;;  %v2231_v38 = vld [vmem:[%s1887_s19 + $0x54] sm:$0xff] }
  0x44   : > { %1613 = vmatmul.msk.bf16.vlgmr.msrb.gmra.mxu1 %vm462_vm3, %v1706_v15  ;;  %v728_v48 = vunpack.c.l.b16 %v680_v44  ;;  %v731_v57 = vunpack.c.l.b16 %v691_v52  ;;  %v1625_v2 = vrot.slane %v1903_v17, 9  ;;  %v699_v4 = vrot.slane %v697_v61, 4 }
  0x45   : > { %v2109_v43 = vpack.c.b16 %v730_v40, %v729_v37  ;;  %v694_v58 = vsel %vm2079_vm7, %v692_v56, %v693_v49  ;;  %v700_v5 = vrot.slane %v1910_v20, 5  ;;  %v704_v20 = vrot.slane %v1992_v55, 5  ;;  %v2210_v40 = vld [vmem:[%s1887_s19 + $0x60] sm:$0xf] }
  0x46   : > { %v2121_v51 = vpack.c.b16 %v728_v48, %v727_v45  ;;  %v732_v59 = vunpack.c.l.b16 %v694_v58  ;;  %v698_v6 = vsel %vm2079_vm7, %v1625_v2, %v697_v61  ;;  %v707_v18 = vrot.slane %v2000_v60, 5  ;;  %v2236_v61 = vld [vmem:[%s1887_s19 + $0x68] sm:$0x1] }
  0x47   : > { %v701_v19 = vsel %vm2079_vm7, %v699_v4, %v700_v5  ;;  %v733_v7 = vunpack.c.l.b16 %v698_v6  ;;  %v706_v15 = vrot.slane %v704_v20, 4  ;;  %v711_v60 = vrot.slane %v1921_v35, 5 }
  0x48   : > { %v2132_v29 = vpack.c.b16 %v732_v59, %v731_v57  ;;  %v734_v9 = vunpack.c.l.b16 %v701_v19  ;;  %v714_v28 = vrot.slane %v1932_v46, 5  ;;  %v2213_v46 = vld [vmem:[%s1887_s19 + $0x64] sm:$0xf]  ;;  %v920_v10 = vshrl.u32 %v2210_v40, 16 }
  0x49   : > { %v708_v55 = vsel %vm2079_vm7, %v706_v15, %v707_v18  ;;  %v713_v8 = vrot.slane %v711_v60, 4  ;;  %v923_v11 = vshll.u32 %v2210_v40, 16  ;;  %v929_v12 = vshll.u32 %v2213_v46, 16 }
  0x4a   : > { %1630 = vmatmul.msk.bf16.vlgmr.msrb.gmra.mxu2 %vm462_vm3, %v741_v31  ;;  %v2169_v17 = vpack.c.b16 %v734_v9, %v733_v7  ;;  %v736_v23 = vunpack.c.l.b16 %v708_v55  ;;  %v1627_v31 = vrot.slane %v1914_v26, 9  ;;  %v718_v44 = vrot.slane %v2015_v27, 5 }
  0x4b   : > { %v715_v35 = vsel %vm2079_vm7, %v713_v8, %v714_v28  ;;  %v933_v45 = vshrl.u32 %v2213_v46, 16  ;;  %v922_v0 = vrot.slane %v920_v10, 4  ;;  %v925_v49 = vrot.slane %v923_v11, 5  ;;  %v2268_v8 = vld [vmem:[%s1887_s19 + $0x60] sm:$0xff] }
  0x4c   : > { %v712_v37 = vsel %vm2079_vm7, %v1627_v31, %v711_v60  ;;  %v738_v26 = vunpack.c.l.b16 %v715_v35  ;;  %v931_v52 = vrot.slane %v929_v12, 5  ;;  %v1628_v56 = vrot.slane %v2004_v62, 9 }
  0x4d   : > { %v737_v39 = vunpack.c.l.b16 %v712_v37  ;;  %v720_v57 = vrot.slane %v718_v44, 4  ;;  %v721_v58 = vrot.slane %v2018_v30, 5  ;;  %v935_v59 = vrot.slane %v933_v45, 4 }
  0x4e   : > { %1643 = vmatmul.msk.bf16.vlgmr.msrb.gmra.mxu3 %vm462_vm3, %v1707_v42  ;;  %v926_v4 = vor.u32 %v925_v49, %v922_v0  ;;  %v719_v5 = vsel %vm2079_vm7, %v1628_v56, %v718_v44  ;;  %v939_v19 = vshll.u32 %v2236_v61, 16 }
  0x4f   : > { %v722_v6 = vsel %vm2079_vm7, %v720_v57, %v721_v58  ;;  %v936_v62 = vor.u32 %v935_v59, %v931_v52  ;;  %v739_v7 = vunpack.c.l.b16 %v719_v5 }
  0x50   : > { %v740_v9 = vunpack.c.l.b16 %v722_v6  ;;  %v941_v18 = vrot.slane %v939_v19, 5 }
  0x51   : > { %v937_v15 = vrot.slane %v936_v62, 4 }
  0x52   : > { %1652 = vmatmul.msk.bf16.vlgmr.msrb.gmra.mxu0 %vm462_vm3, %v455_v14  ;;  %v1626_v14 = vrot.slane %v1984_v41, 9  ;;  %v2255_v55 = vpack.c.b16 %v740_v9, %v739_v7 }
  0x53   : > { %v942_v60 = vsel %vm1925_vm4, %v937_v15, %v941_v18 }
  0x54   : > { %1614 = vmatmul.msk.bf16.gmra.mxu1 %vm462_vm3, %v1707_v42  ;;  %v705_v21 = vsel %vm2079_vm7, %v1626_v14, %v704_v20  ;;  %v2217_v42 = vpack.c.b16 %v738_v26, %v737_v39  ;;  %v927_v14 = vrot.slane %v926_v4, 4  ;;  %v946_v37 = vunpack.c.l.b16 %v942_v60 }
  0x55   : > { %v735_v22 = vunpack.c.l.b16 %v705_v21 }
  0x57   : > { %v2189_v41 = vpack.c.b16 %v736_v23, %v735_v22  ;;  %v932_v23 = vsel %vm1925_vm4, %v927_v14, %v931_v52 }
  0x58   : > { %v945_v28 = vunpack.c.l.b16 %v932_v23 }
  0x5a   : > { %1631 = vmatmul.msk.bf16.gmra.mxu2 %vm462_vm3, %v2121_v51  ;;  %v2274_v39 = vpack.c.b16 %v946_v37, %v945_v28 }
  0x5e   : > { %1644 = vmatmul.msk.bf16.gmra.mxu3 %vm462_vm3, %v2130_v16 }
  0x62   : > { %1653 = vmatmul.msk.bf16.gmra.mxu0 %vm462_vm3, %v1944_v63 }
  0x64   : > { %1615 = vmatmul.msk.bf16.gmra.mxu1 %vm462_vm3, %v2130_v16 }
  0x6a   : > { %1632 = vmatmul.msk.bf16.gmra.mxu2 %vm462_vm3, %v2109_v43 }
  0x6e   : > { %1645 = vmatmul.msk.bf16.gmra.mxu3 %vm462_vm3, %v2143_v33 }
  0x72   : > { %1654 = vmatmul.msk.bf16.gmra.mxu0 %vm462_vm3, %v2030_v50 }
  0x74   : > { %1616 = vmatmul.msk.bf16.gmra.mxu1 %vm462_vm3, %v2143_v33 }
  0x7a   : > { %1633 = vmatmul.msk.bf16.gmra.mxu2 %vm462_vm3, %v2132_v29 }
  0x7e   : > { %1646 = vmatmul.msk.bf16.gmra.mxu3 %vm462_vm3, %v2155_v3 }
  0x82   : > { %1655 = vmatmul.msk.bf16.gmra.mxu0 %vm462_vm3, %v1967_v24 }
  0x84   : > { %1617 = vmatmul.msk.bf16.gmra.mxu1 %vm462_vm3, %v2155_v3 }
  0x8a   : > { %1634 = vmatmul.msk.bf16.gmra.mxu2 %vm462_vm3, %v2169_v17 }
  0x8e   : > { %1647 = vmatmul.msk.bf16.gmra.mxu3 %vm462_vm3, %v2175_v13 }
  0x92   : > { %1656 = vmatmul.msk.bf16.gmra.mxu0 %vm462_vm3, %v2052_v32 }
  0x94   : > { %1618 = vmatmul.msk.bf16.gmra.mxu1 %vm462_vm3, %v2175_v13 }
  0x9a   : > { %1635 = vmatmul.msk.bf16.gmra.mxu2 %vm462_vm3, %v2189_v41 }
  0x9e   : > { %1648 = vmatmul.msk.bf16.gmra.mxu3 %vm462_vm3, %v2195_v25 }
  0x9f   : > { %v2201_v34 = vpop.f32.mrf.mxu1 }
  0xa2   : > { %1657 = vmatmul.msk.bf16.gmra.mxu0 %vm462_vm3, %v1988_v47 }
  0xa4   : > { %1619 = vmatmul.msk.bf16.gmra.mxu1 %vm462_vm3, %v2195_v25 }
  0xa7   : > { %v2222_v53 = vpop.f32.mrf.mxu1 }
  0xa9   : > { %v2226_v48 = vpop.f32.mrf.mxu2 }
  0xaa   : > { %1636 = vmatmul.msk.bf16.gmra.mxu2 %vm462_vm3, %v2217_v42 }
  0xad   : > { %v500_v27 = vpop.f32.mrf.mxu0  ;;  %v2238_v2 = vpop.f32.mrf.mxu3 }
  0xae   : > { %1649 = vmatmul.msk.bf16.gmra.mxu3 %vm462_vm3, %v2231_v38 }
  0xb1   : > { %v2247_v30 = vpop.f32.mrf.mxu1  ;;  %v2251_v20 = vpop.f32.mrf.mxu2 }
  0xb2   : > { %1658 = vmatmul.msk.bf16.gmra.mxu0 %vm462_vm3, %v2074_v1 }
  0xb4   : > { %1620 = vmatmul.msk.bf16.gmra.mxu1 %vm462_vm3, %v2231_v38 }
  0xb5   : > { %v502_v21 = vpop.f32.mrf.mxu0  ;;  %v2257_v22 = vpop.f32.mrf.mxu3 }
  0xb9   : > { %v2263_v31 = vpop.f32.mrf.mxu1 }
  0xba   : > { %1637 = vmatmul.msk.bf16.gmra.mxu2 %vm462_vm3, %v2255_v55 }
  0xbd   : > { %v2270_v35 = vpop.f32.mrf.mxu2 }
  0xbe   : > { %1650 = vmatmul.msk.bf16.gmra.mxu3 %vm462_vm3, %v2268_v8 }
  0xbf   : > { %v505_v26 = vpop.f32.mrf.mxu0 }
  0xc1   : > { %v2276_v10 = vpop.f32.mrf.mxu3  ;;  %v616_v11 = vpop.f32.mrf.mxu1 }
  0xc2   : > { %1659 = vmatmul.msk.bf16.gmra.mxu0 %vm462_vm3, %v2274_v39  ;;  %v617_v12 = vadd.f32 %v616_v11, %v500_v27 }
  0xc4   : > { %1662 = vmatmul.msk.bf16.vlgmr.msra.gmra.mxu1 %vm462_vm3, %v2121_v51 }
  0xc5   : > { %v2282_v44 = vpop.f32.mrf.mxu2 }
  0xc7   : > { %v507_v45 = vpop.f32.mrf.mxu0 }
  0xc9   : > { %v2284_v0 = vpop.f32.mrf.mxu3  ;;  %v618_v49 = vpop.f32.mrf.mxu1 }
  0xca   : > { %1675 = vmatmul.msk.bf16.vlgmr.msra.gmra.mxu2 %vm462_vm3, %v2130_v16  ;;  %v619_v52 = vadd.f32 %v618_v49, %v502_v21 }
  0xcd   : > { %v785_v56 = vpop.f32.mrf.mxu2 }
  0xce   : > { %1684 = vmatmul.msk.bf16.vlgmr.msra.gmra.mxu3 %vm462_vm3, %v1944_v63  ;;  %v825_v57 = vadd.f32 %v785_v56, %v617_v12 }
  0xcf   : > { %v963_v58 = vpop.f32.mrf.mxu0 }
  0xd1   : > { %v863_v59 = vpop.f32.mrf.mxu3  ;;  %v621_v27 = vpop.f32.mrf.mxu1 }
  0xd2   : > { %1694 = vmatmul.msk.bf16.vlgmr.msra.gmra.mxu0 %vm462_vm3, %v2109_v43  ;;  %v903_v51 = vadd.f32 %v863_v59, %v825_v57  ;;  %v622_v4 = vadd.f32 %v621_v27, %v505_v26 }
  0xd4   : > { %1663 = vmatmul.msk.bf16.gmra.mxu1 %vm462_vm3, %v2109_v43  ;;  %v2294_v5 = vadd.f32 %v963_v58, %v903_v51 }
  0xd5   : > { %v787_v16 = vpop.f32.mrf.mxu2 }
  0xd6   : > { %v826_v6 = vadd.f32 %v787_v16, %v619_v52 }
  0xd7   : > { %v965_v62 = vpop.f32.mrf.mxu0 }
  0xd9   : > { %v865_v19 = vpop.f32.mrf.mxu3  ;;  %v623_v7 = vpop.f32.mrf.mxu1 }
  0xda   : > { %v904_v63 = vadd.f32 %v865_v19, %v826_v6  ;;  %1676 = vmatmul.msk.bf16.gmra.mxu2 %vm462_vm3, %v2143_v33  ;;  %v624_v9 = vadd.f32 %v623_v7, %v507_v45 }
  0xdc   : > { %v2298_v14 = vadd.f32 %v965_v62, %v904_v63 }
  0xdd   : > { %v790_v15 = vpop.f32.mrf.mxu2 }
  0xde   : > { %1685 = vmatmul.msk.bf16.gmra.mxu3 %vm462_vm3, %v2030_v50  ;;  %v827_v18 = vadd.f32 %v790_v15, %v622_v4 }
  0xdf   : > { %v968_v43 = vpop.f32.mrf.mxu0 }
  0xe1   : > { %v868_v21 = vpop.f32.mrf.mxu3  ;;  %v626_v23 = vpop.f32.mrf.mxu1 }
  0xe2   : > { %1695 = vmatmul.msk.bf16.gmra.mxu0 %vm462_vm3, %v2132_v29  ;;  %v905_v60 = vadd.f32 %v868_v21, %v827_v18  ;;  %v627_v28 = vadd.f32 %v626_v23, %v2201_v34 }
  0xe4   : > { %1664 = vmatmul.msk.bf16.gmra.mxu1 %vm462_vm3, %v2132_v29  ;;  %v2307_v33 = vadd.f32 %v968_v43, %v905_v60 }
  0xe5   : > { %v792_v37 = vpop.f32.mrf.mxu2 }
  0xe6   : > { %v828_v26 = vadd.f32 %v792_v37, %v624_v9 }
  0xe7   : > { %v970_v11 = vpop.f32.mrf.mxu0 }
  0xe9   : > { %v870_v12 = vpop.f32.mrf.mxu3  ;;  %v628_v50 = vpop.f32.mrf.mxu1 }
  0xea   : > { %v906_v45 = vadd.f32 %v870_v12, %v828_v26  ;;  %1677 = vmatmul.msk.bf16.gmra.mxu2 %vm462_vm3, %v2155_v3  ;;  %v629_v49 = vadd.f32 %v628_v50, %v2222_v53 }
  0xec   : > { %v2312_v52 = vadd.f32 %v970_v11, %v906_v45 }
  0xed   : > { %v795_v56 = vpop.f32.mrf.mxu2 }
  0xee   : > { %1686 = vmatmul.msk.bf16.gmra.mxu3 %vm462_vm3, %v1967_v24  ;;  %v829_v29 = vadd.f32 %v795_v56, %v627_v28 }
  0xef   : > { %v973_v34 = vpop.f32.mrf.mxu0 }
  0xf1   : > { %v873_v57 = vpop.f32.mrf.mxu3  ;;  %v631_v58 = vpop.f32.mrf.mxu1 }
  0xf2   : > { %1696 = vmatmul.msk.bf16.gmra.mxu0 %vm462_vm3, %v2169_v17  ;;  %v907_v59 = vadd.f32 %v873_v57, %v829_v29  ;;  %v632_v27 = vadd.f32 %v631_v58, %v2247_v30 }
  0xf4   : > { %1665 = vmatmul.msk.bf16.gmra.mxu1 %vm462_vm3, %v2169_v17  ;;  %v2321_v3 = vadd.f32 %v973_v34, %v907_v59 }
  0xf5   : > { %v797_v53 = vpop.f32.mrf.mxu2 }
  0xf6   : > { %v830_v51 = vadd.f32 %v797_v53, %v629_v49  ;;  %v2359_v53 = vld [vmem:[%s1887_s19 + $0x6c] sm:$0xf] }
  0xf7   : > { %v975_v4 = vpop.f32.mrf.mxu0 }
  0xf9   : > { %v875_v16 = vpop.f32.mrf.mxu3  ;;  %v633_v24 = vpop.f32.mrf.mxu1 }
  0xfa   : > { %v908_v6 = vadd.f32 %v875_v16, %v830_v51  ;;  %1678 = vmatmul.msk.bf16.gmra.mxu2 %vm462_vm3, %v2175_v13  ;;  %v634_v62 = vadd.f32 %v633_v24, %v2263_v31  ;;  %v2362_v51 = vld [vmem:[%s1887_s19 + $0x70] sm:$0xf]  ;;  %v1182_v24 = vshrl.u32 %v2359_v53, 16 }
  0xfc   : > { %v2326_v19 = vadd.f32 %v975_v4, %v908_v6  ;;  %v1660_v6 = vrot.slane %v2210_v40, 9 }
  0xfd   : > { %v800_v7 = vpop.f32.mrf.mxu2 }
  0xfe   : > { %1687 = vmatmul.msk.bf16.gmra.mxu3 %vm462_vm3, %v2052_v32  ;;  %v831_v17 = vadd.f32 %v800_v7, %v632_v27  ;;  %v1022_v27 = vrot.slane %v2213_v46, 5  ;;  %v1195_v7 = vshrl.u32 %v2362_v51, 16 }
  0xff   : > { %v978_v30 = vpop.f32.mrf.mxu0 }
 0x100   : > { %v1024_v46 = vrot.slane %v1022_v27, 4  ;;  %v1023_v40 = vsel %vm2079_vm7, %v1660_v6, %v1022_v27 }
 0x101   : > { %v878_v63 = vpop.f32.mrf.mxu3  ;;  %v636_v9 = vpop.f32.mrf.mxu1 }
 0x102   : > { %1697 = vmatmul.msk.bf16.gmra.mxu0 %vm462_vm3, %v2189_v41  ;;  %v909_v15 = vadd.f32 %v878_v63, %v831_v17  ;;  %v637_v32 = vadd.f32 %v636_v9, %v2226_v48  ;;  %v1184_v9 = vrot.slane %v1182_v24, 4  ;;  %v1715_v24 = vld [vmem:[%s1887_s19 + $0x6c] sm:$0xff] }
 0x104   : > { %1666 = vmatmul.msk.bf16.gmra.mxu1 %vm462_vm3, %v2189_v41  ;;  %v2334_v13 = vadd.f32 %v978_v30, %v909_v15 }
 0x105   : > { %v802_v31 = vpop.f32.mrf.mxu2 }
 0x106   : > { %v832_v18 = vadd.f32 %v802_v31, %v634_v62  ;;  %v1191_v62 = vshll.u32 %v2362_v51, 16 }
 0x107   : > { %v980_v43 = vpop.f32.mrf.mxu0 }
 0x109   : > { %v880_v21 = vpop.f32.mrf.mxu3  ;;  %v638_v23 = vpop.f32.mrf.mxu1 }
 0x10a   : > { %v910_v60 = vadd.f32 %v880_v21, %v832_v18  ;;  %1679 = vmatmul.msk.bf16.gmra.mxu2 %vm462_vm3, %v2195_v25  ;;  %v639_v45 = vadd.f32 %v638_v23, %v2251_v20  ;;  %v1197_v21 = vrot.slane %v1195_v7, 4  ;;  %v239_v23 = vld [vmem:[%s1887_s19 + $0x74] sm:$0x1] }
 0x10c   : > { %v2339_v28 = vadd.f32 %v980_v43, %v910_v60  ;;  %v1193_v43 = vrot.slane %v1191_v62, 5 }
 0x10d   : > { %v805_v37 = vpop.f32.mrf.mxu2 }
 0x10e   : > { %1688 = vmatmul.msk.bf16.gmra.mxu3 %vm462_vm3, %v1988_v47  ;;  %v833_v41 = vadd.f32 %v805_v37, %v637_v32 }
 0x10f   : > { %v983_v26 = vpop.f32.mrf.mxu0 }
 0x111   : > { %v883_v11 = vpop.f32.mrf.mxu3  ;;  %v641_v12 = vpop.f32.mrf.mxu1 }
 0x112   : > { %1698 = vmatmul.msk.bf16.gmra.mxu0 %vm462_vm3, %v2217_v42  ;;  %v911_v50 = vadd.f32 %v883_v11, %v833_v41  ;;  %v642_v57 = vadd.f32 %v641_v12, %v2270_v35  ;;  %v1201_v11 = vshll.u32 %v239_v23, 16 }
 0x114   : > { %1667 = vmatmul.msk.bf16.gmra.mxu1 %vm462_vm3, %v2217_v42  ;;  %v2348_v25 = vadd.f32 %v983_v26, %v911_v50  ;;  %v1198_v26 = vor.u32 %v1197_v21, %v1193_v43 }
 0x115   : > { %v807_v48 = vpop.f32.mrf.mxu2 }
 0x116   : > { %v834_v49 = vadd.f32 %v807_v48, %v639_v45 }
 0x117   : > { %v985_v47 = vpop.f32.mrf.mxu0 }
 0x119   : > { %v885_v56 = vpop.f32.mrf.mxu3  ;;  %v643_v29 = vpop.f32.mrf.mxu1 }
 0x11a   : > { %v912_v34 = vadd.f32 %v885_v56, %v834_v49  ;;  %1680 = vmatmul.msk.bf16.gmra.mxu2 %vm462_vm3, %v2231_v38  ;;  %v1025_v38 = vrot.slane %v2236_v61, 5  ;;  %v644_v17 = vadd.f32 %v643_v29, %v2282_v44  ;;  %v1199_v29 = vrot.slane %v1198_v26, 4 }
 0x11c   : > { %v2353_v58 = vadd.f32 %v985_v47, %v912_v34  ;;  %v1026_v18 = vsel %vm2079_vm7, %v1024_v46, %v1025_v38  ;;  %v1203_v34 = vrot.slane %v1201_v11, 5 }
 0x11d   : > { %v810_v20 = vpop.f32.mrf.mxu2  ;;  %v1030_v37 = vunpack.c.l.b16 %v1026_v18 }
 0x11e   : > { %1689 = vmatmul.msk.bf16.gmra.mxu3 %vm462_vm3, %v2074_v1  ;;  %v835_v42 = vadd.f32 %v810_v20, %v642_v57  ;;  %v1185_v1 = vshll.u32 %v2359_v53, 16 }
 0x11f   : > { %v988_v59 = vpop.f32.mrf.mxu0 }
 0x120   : > { %v1187_v15 = vrot.slane %v1185_v1, 5 }
 0x121   : > { %v888_v4 = vpop.f32.mrf.mxu3  ;;  %v646_v16 = vpop.f32.mrf.mxu1 }
 0x122   : > { %1699 = vmatmul.msk.bf16.gmra.mxu0 %vm462_vm3, %v2255_v55  ;;  %v913_v35 = vadd.f32 %v888_v4, %v835_v42  ;;  %v1188_v41 = vor.u32 %v1187_v15, %v1184_v9  ;;  %v647_v12 = vadd.f32 %v646_v16, %v2238_v2  ;;  %v1287_v4 = vrot.slane %v239_v23, 5 }
 0x124   : > { %1668 = vmatmul.msk.bf16.gmra.mxu1 %vm462_vm3, %v2255_v55  ;;  %v2375_v61 = vadd.f32 %v988_v59, %v913_v35  ;;  %v1029_v55 = vunpack.c.l.b16 %v1023_v40  ;;  %v1189_v47 = vrot.slane %v1188_v41, 4  ;;  %v1692_v59 = vrot.slane %v2359_v53, 9 }
 0x125   : > { %v812_v30 = vpop.f32.mrf.mxu2 }
 0x126   : > { %v836_v63 = vadd.f32 %v812_v30, %v644_v17  ;;  %v1031_v48 = vpack.c.b16 %v1030_v37, %v1029_v55  ;;  %v1194_v42 = vsel %vm1925_vm4, %v1189_v47, %v1193_v43 }
 0x127   : > { %v990_v31 = vpop.f32.mrf.mxu0  ;;  %v1207_v1 = vunpack.c.l.b16 %v1194_v42 }
 0x129   : > { %v890_v44 = vpop.f32.mrf.mxu3  ;;  %v648_v60 = vpop.f32.mrf.mxu1 }
 0x12a   : > { %v914_v32 = vadd.f32 %v890_v44, %v836_v63  ;;  %1681 = vmatmul.msk.bf16.gmra.mxu2 %vm462_vm3, %v2268_v8  ;;  %v1284_v8 = vrot.slane %v2362_v51, 5  ;;  %v649_v16 = vadd.f32 %v648_v60, %v2257_v22 }
 0x12c   : > { %v2385_v50 = vadd.f32 %v990_v31, %v914_v32  ;;  %v1286_v27 = vrot.slane %v1284_v8, 4  ;;  %v1285_v36 = vsel %vm2079_vm7, %v1692_v59, %v1284_v8 }
 0x12d   : > { %v815_v45 = vpop.f32.mrf.mxu2  ;;  %v1291_v30 = vunpack.c.l.b16 %v1285_v36 }
 0x12e   : > { %1690 = vmatmul.msk.bf16.gmra.mxu3 %vm462_vm3, %v2274_v39  ;;  %v837_v49 = vadd.f32 %v815_v45, %v647_v12  ;;  %v1204_v39 = vsel %vm1925_vm4, %v1199_v29, %v1203_v34  ;;  %v1288_v53 = vsel %vm2079_vm7, %v1286_v27, %v1287_v4 }
 0x12f   : > { %v993_v56 = vpop.f32.mrf.mxu0  ;;  %v1208_v6 = vunpack.c.l.b16 %v1204_v39  ;;  %v1292_v63 = vunpack.c.l.b16 %v1288_v53 }
 0x131   : > { %v893_v57 = vpop.f32.mrf.mxu3  ;;  %v651_v20 = vpop.f32.mrf.mxu1  ;;  %v1209_v17 = vpack.c.b16 %v1208_v6, %v1207_v1  ;;  %v1293_v40 = vpack.c.b16 %v1292_v63, %v1291_v30 }
 0x132   : > { %1700 = vmatmul.msk.bf16.gmra.mxu0 %vm462_vm3, %v1031_v48  ;;  %v915_v2 = vadd.f32 %v893_v57, %v837_v49  ;;  %v652_v9 = vadd.f32 %v651_v20, %v2276_v10 }
 0x134   : > { %1669 = vmatmul.msk.bf16.gmra.mxu1 %vm462_vm3, %v1031_v48  ;;  %v2398_v51 = vadd.f32 %v993_v56, %v915_v2 }
 0x135   : > { %v817_v38 = vpop.f32.mrf.mxu2 }
 0x136   : > { %v838_v35 = vadd.f32 %v817_v38, %v649_v16 }
 0x137   : > { %v995_v46 = vpop.f32.mrf.mxu0 }
 0x139   : > { %v895_v62 = vpop.f32.mrf.mxu3  ;;  %v653_v7 = vpop.f32.mrf.mxu1 }
 0x13a   : > { %v916_v22 = vadd.f32 %v895_v62, %v838_v35  ;;  %1682 = vmatmul.msk.bf16.gmra.mxu2 %vm462_vm3, %v1715_v24  ;;  %v654_v44 = vadd.f32 %v653_v7, %v2284_v0 }
 0x13c   : > { %v2407_v15 = vadd.f32 %v995_v46, %v916_v22 }
 0x13d   : > { %v820_v31 = vpop.f32.mrf.mxu2 }
 0x13e   : > { %1691 = vmatmul.msk.bf16.gmra.mxu3 %vm462_vm3, %v1209_v17  ;;  %v839_v54 = vadd.f32 %v820_v31, %v652_v9 }
 0x13f   : > { %v998_v18 = vpop.f32.mrf.mxu0 }
 0x141   : > { %v898_v43 = vpop.f32.mrf.mxu3  ;;  %v1047_v21 = vpop.f32.mrf.mxu1 }
 0x142   : > { %1701 = vmatmul.msk.bf16.gmra.mxu0 %vm462_vm3, %v1293_v40  ;;  %v917_v23 = vadd.f32 %v898_v43, %v839_v54  ;;  %v1087_v11 = vadd.f32 %v1047_v21, %v2294_v5 }
 0x144   : > { %v2414_v60 = vadd.f32 %v998_v18, %v917_v23 }
 0x145   : > { %v822_v10 = vpop.f32.mrf.mxu2 }
 0x146   : > { %v840_v32 = vadd.f32 %v822_v10, %v654_v44 }
 0x147   : > { %v1000_v55 = vpop.f32.mrf.mxu0 }
 0x149   : > { %v900_v37 = vpop.f32.mrf.mxu3  ;;  %v1049_v41 = vpop.f32.mrf.mxu1 }
 0x14a   : > { %v918_v26 = vadd.f32 %v900_v37, %v840_v32  ;;  %v1088_v5 = vadd.f32 %v1049_v41, %v2298_v14 }
 0x14c   : > { %v2417_v12 = vadd.f32 %v1000_v55, %v918_v26 }
 0x14d   : > { %v1125_v45 = vpop.f32.mrf.mxu2 }
 0x14e   : > { %v1165_v48 = vadd.f32 %v1125_v45, %v1087_v11 }
 0x14f   : > { %v1309_v49 = vpop.f32.mrf.mxu0 }
 0x151   : > { %v1225_v0 = vpop.f32.mrf.mxu3  ;;  %v1052_v47 = vpop.f32.mrf.mxu1 }
 0x152   : > { %v1265_v56 = vadd.f32 %v1225_v0, %v1165_v48  ;;  %v1089_v59 = vadd.f32 %v1052_v47, %v2307_v33 }
 0x154   : > { %v2424_v29 = vadd.f32 %v1309_v49, %v1265_v56 }
 0x155   : > { %v1127_v34 = vpop.f32.mrf.mxu2 }
 0x156   : > { %1365 = vst [vmem:[%s2422_s7] sm:$0xff] %v2424_v29  ;;  %v1166_v8 = vadd.f32 %v1127_v34, %v1088_v5 }
 0x157   : > { %v1311_v57 = vpop.f32.mrf.mxu0 }
 0x159   : > { %v1227_v20 = vpop.f32.mrf.mxu3  ;;  %v1054_v2 = vpop.f32.mrf.mxu1 }
 0x15a   : > { %v1266_v42 = vadd.f32 %v1227_v20, %v1166_v8  ;;  %v1090_v1 = vadd.f32 %v1054_v2, %v2312_v52 }
 0x15c   : > { %v2429_v39 = vadd.f32 %v1311_v57, %v1266_v42 }
 0x15d   : > { %v1130_v27 = vpop.f32.mrf.mxu2 }
 0x15e   : > { %1366 = vst [vmem:[%s2422_s7 + $0x8] sm:$0xff] %v2429_v39  ;;  %v1167_v4 = vadd.f32 %v1130_v27, %v1089_v59 }
 0x15f   : > { %v1314_v16 = vpop.f32.mrf.mxu0 }
 0x161   : > { %v1230_v14 = vpop.f32.mrf.mxu3  ;;  %v1057_v38 = vpop.f32.mrf.mxu1 }
 0x162   : > { %v1267_v35 = vadd.f32 %v1230_v14, %v1167_v4  ;;  %v1091_v22 = vadd.f32 %v1057_v38, %v2321_v3 }
 0x164   : > { %v2434_v24 = vadd.f32 %v1314_v16, %v1267_v35 }
 0x165   : > { %v1132_v6 = vpop.f32.mrf.mxu2 }
 0x166   : > { %1367 = vst [vmem:[%s2422_s7 + $0x10] sm:$0xff] %v2434_v24  ;;  %v1168_v46 = vadd.f32 %v1132_v6, %v1090_v1 }
 0x167   : > { %v1316_v36 = vpop.f32.mrf.mxu0 }
 0x169   : > { %v1232_v33 = vpop.f32.mrf.mxu3  ;;  %v1059_v53 = vpop.f32.mrf.mxu1 }
 0x16a   : > { %v1268_v62 = vadd.f32 %v1232_v33, %v1168_v46  ;;  %v1092_v54 = vadd.f32 %v1059_v53, %v2326_v19 }
 0x16c   : > { %v2439_v7 = vadd.f32 %v1316_v36, %v1268_v62 }
 0x16d   : > { %v1135_v17 = vpop.f32.mrf.mxu2 }
 0x16e   : > { %1368 = vst [vmem:[%s2422_s7 + $0x18] sm:$0xff] %v2439_v7  ;;  %v1169_v30 = vadd.f32 %v1135_v17, %v1091_v22 }
 0x16f   : > { %v1319_v63 = vpop.f32.mrf.mxu0 }
 0x171   : > { %v1235_v52 = vpop.f32.mrf.mxu3  ;;  %v1062_v9 = vpop.f32.mrf.mxu1 }
 0x172   : > { %v1269_v31 = vadd.f32 %v1235_v52, %v1169_v30  ;;  %v1093_v32 = vadd.f32 %v1062_v9, %v2334_v13 }
 0x174   : > { %v2444_v40 = vadd.f32 %v1319_v63, %v1269_v31 }
 0x175   : > { %v1137_v18 = vpop.f32.mrf.mxu2 }
 0x176   : > { %1369 = vst [vmem:[%s2422_s7 + $0x20] sm:$0xff] %v2444_v40  ;;  %v1170_v43 = vadd.f32 %v1137_v18, %v1092_v54 }
 0x177   : > { %v1321_v21 = vpop.f32.mrf.mxu0 }
 0x179   : > { %v1237_v3 = vpop.f32.mrf.mxu3  ;;  %v1064_v23 = vpop.f32.mrf.mxu1 }
 0x17a   : > { %v1270_v44 = vadd.f32 %v1237_v3, %v1170_v43  ;;  %v1094_v48 = vadd.f32 %v1064_v23, %v2339_v28 }
 0x17c   : > { %v2449_v10 = vadd.f32 %v1321_v21, %v1270_v44 }
 0x17d   : > { %v1140_v55 = vpop.f32.mrf.mxu2 }
 0x17e   : > { %1370 = vst [vmem:[%s2422_s7 + $0x28] sm:$0xff] %v2449_v10  ;;  %v1171_v37 = vadd.f32 %v1140_v55, %v1093_v32 }
 0x17f   : > { %v1324_v41 = vpop.f32.mrf.mxu0 }
 0x181   : > { %v1240_v19 = vpop.f32.mrf.mxu3  ;;  %v1067_v26 = vpop.f32.mrf.mxu1 }
 0x182   : > { %v1271_v11 = vadd.f32 %v1240_v19, %v1171_v37  ;;  %v1095_v8 = vadd.f32 %v1067_v26, %v2348_v25 }
 0x184   : > { %v2454_v45 = vadd.f32 %v1324_v41, %v1271_v11 }
 0x185   : > { %v1142_v49 = vpop.f32.mrf.mxu2 }
 0x186   : > { %1371 = vst [vmem:[%s2422_s7 + $0x30] sm:$0xff] %v2454_v45  ;;  %v1172_v0 = vadd.f32 %v1142_v49, %v1094_v48 }
 0x187   : > { %v1326_v47 = vpop.f32.mrf.mxu0 }
 0x189   : > { %v1242_v13 = vpop.f32.mrf.mxu3  ;;  %v1069_v56 = vpop.f32.mrf.mxu1 }
 0x18a   : > { %v1272_v5 = vadd.f32 %v1242_v13, %v1172_v0  ;;  %v1096_v4 = vadd.f32 %v1069_v56, %v2353_v58 }
 0x18c   : > { %v2459_v34 = vadd.f32 %v1326_v47, %v1272_v5 }
 0x18d   : > { %v1145_v57 = vpop.f32.mrf.mxu2 }
 0x18e   : > { %1372 = vst [vmem:[%s2422_s7 + $0x38] sm:$0xff] %v2459_v34  ;;  %v1173_v20 = vadd.f32 %v1145_v57, %v1095_v8 }
 0x18f   : > { %v1329_v2 = vpop.f32.mrf.mxu0 }
 0x191   : > { %v1245_v28 = vpop.f32.mrf.mxu3  ;;  %v1072_v42 = vpop.f32.mrf.mxu1 }
 0x192   : > { %v1273_v59 = vadd.f32 %v1245_v28, %v1173_v20  ;;  %v1097_v46 = vadd.f32 %v1072_v42, %v2375_v61 }
 0x194   : > { %v2464_v27 = vadd.f32 %v1329_v2, %v1273_v59 }
 0x195   : > { %v1147_v16 = vpop.f32.mrf.mxu2 }
 0x196   : > { %1373 = vst [vmem:[%s2422_s7 + $0x40] sm:$0xff] %v2464_v27  ;;  %v1174_v14 = vadd.f32 %v1147_v16, %v1096_v4 }
 0x197   : > { %v1331_v38 = vpop.f32.mrf.mxu0 }
 0x199   : > { %v1247_v25 = vpop.f32.mrf.mxu3  ;;  %v1074_v35 = vpop.f32.mrf.mxu1 }
 0x19a   : > { %v1274_v1 = vadd.f32 %v1247_v25, %v1174_v14  ;;  %v1098_v30 = vadd.f32 %v1074_v35, %v2385_v50 }
 0x19c   : > { %v2469_v6 = vadd.f32 %v1331_v38, %v1274_v1 }
 0x19d   : > { %v1150_v36 = vpop.f32.mrf.mxu2 }
 0x19e   : > { %1374 = vst [vmem:[%s2422_s7 + $0x48] sm:$0xff] %v2469_v6  ;;  %v1175_v33 = vadd.f32 %v1150_v36, %v1097_v46 }
 0x19f   : > { %v1334_v53 = vpop.f32.mrf.mxu0 }
 0x1a1   : > { %v1250_v58 = vpop.f32.mrf.mxu3  ;;  %v1077_v22 = vpop.f32.mrf.mxu1 }
 0x1a2   : > { %v1275_v62 = vadd.f32 %v1250_v58, %v1175_v33  ;;  %v1099_v18 = vadd.f32 %v1077_v22, %v2398_v51 }
 0x1a4   : > { %v2474_v17 = vadd.f32 %v1334_v53, %v1275_v62 }
 0x1a5   : > { %v1152_v63 = vpop.f32.mrf.mxu2 }
 0x1a6   : > { %1375 = vst [vmem:[%s2422_s7 + $0x50] sm:$0xff] %v2474_v17  ;;  %v1176_v52 = vadd.f32 %v1152_v63, %v1098_v30 }
 0x1a7   : > { %v1336_v9 = vpop.f32.mrf.mxu0 }
 0x1a9   : > { %v1252_v61 = vpop.f32.mrf.mxu3  ;;  %v1079_v43 = vpop.f32.mrf.mxu1 }
 0x1aa   : > { %v1276_v31 = vadd.f32 %v1252_v61, %v1176_v52  ;;  %v1100_v55 = vadd.f32 %v1079_v43, %v2407_v15 }
 0x1ac   : > { %v2479_v54 = vadd.f32 %v1336_v9, %v1276_v31 }
 0x1ad   : > { %v1155_v21 = vpop.f32.mrf.mxu2 }
 0x1ae   : > { %1376 = vst [vmem:[%s2422_s7 + $0x58] sm:$0xff] %v2479_v54  ;;  %v1177_v3 = vadd.f32 %v1155_v21, %v1099_v18 }
 0x1af   : > { %v1339_v23 = vpop.f32.mrf.mxu0 }
 0x1b1   : > { %v1255_v50 = vpop.f32.mrf.mxu3  ;;  %v1082_v19 = vpop.f32.mrf.mxu1 }
 0x1b2   : > { %v1277_v44 = vadd.f32 %v1255_v50, %v1177_v3  ;;  %v1101_v49 = vadd.f32 %v1082_v19, %v2414_v60 }
 0x1b4   : > { %v2484_v32 = vadd.f32 %v1339_v23, %v1277_v44 }
 0x1b5   : > { %v1157_v37 = vpop.f32.mrf.mxu2 }
 0x1b6   : > { %1377 = vst [vmem:[%s2422_s7 + $0x60] sm:$0xff] %v2484_v32  ;;  %v1178_v41 = vadd.f32 %v1157_v37, %v1100_v55 }
 0x1b7   : > { %v1341_v51 = vpop.f32.mrf.mxu0 }
 0x1b9   : > { %v1257_v26 = vpop.f32.mrf.mxu3  ;;  %v1084_v13 = vpop.f32.mrf.mxu1 }
 0x1ba   : > { %v1278_v11 = vadd.f32 %v1257_v26, %v1178_v41  ;;  %v1102_v57 = vadd.f32 %v1084_v13, %v2417_v12 }
 0x1bc   : > { %v1362_v48 = vadd.f32 %v1341_v51, %v1278_v11 }
 0x1bd   : > { %v1160_v0 = vpop.f32.mrf.mxu2 }
 0x1be   : > { %1378 = vst [vmem:[%s2422_s7 + $0x68] sm:$0xff] %v1362_v48  ;;  %v1179_v47 = vadd.f32 %v1160_v0, %v1101_v49 }
 0x1bf   : > { %v1344_v56 = vpop.f32.mrf.mxu0 }
 0x1c1   : > { %v1260_v5 = vpop.f32.mrf.mxu3 }
 0x1c2   : > { %v1279_v15 = vadd.f32 %v1260_v5, %v1179_v47 }
 0x1c4   : > { %v1363_v8 = vadd.f32 %v1344_v56, %v1279_v15 }
 0x1c5   : > { %v1162_v20 = vpop.f32.mrf.mxu2 }
 0x1c6   : > { %1379 = vst [vmem:[%s2422_s7 + $0x70] sm:$0xff] %v1363_v8  ;;  %v1180_v2 = vadd.f32 %v1162_v20, %v1102_v57 }
 0x1c7   : > { %v1346_v59 = vpop.f32.mrf.mxu0 }
 0x1c9   : > { %v1262_v28 = vpop.f32.mrf.mxu3 }
 0x1ca   : > { %v1280_v42 = vadd.f32 %v1262_v28, %v1180_v2  ;;  %1384 = sbr.rel (%p1702_p7) target bundleno = 465 (0x1d1), region = 32 }
 0x1cc   : > { %v1364_v4 = vadd.f32 %v1346_v59, %v1280_v42 }
 0x1ce   : > { %1380 = vst [vmem:[%s2422_s7 + $0x78] sm:$0xff] %v1364_v4 }
 0x1cf   : > { %v1801_v60 = vmov 0.0  }
 0x1d0   : > { %1385 = vst [vmem:[%s1876_s6] sm:$0x3] %v1801_v60 }
 0x1d1 PF: > { %v1387_v16 = vadd.f32 %v2429_v39, %v2424_v29  ;;  %v1411_v12 = vmul.f32 %v2424_v29, %v2424_v29  ;;  %v1412_v14 = vmul.f32 %v2429_v39, %v2429_v39  ;;  %v1413_v25 = vmul.f32 %v2434_v24, %v2434_v24 }
 0x1d2   : > { %v1414_v1 = vmul.f32 %v2439_v7, %v2439_v7  ;;  %v1415_v33 = vmul.f32 %v2444_v40, %v2444_v40  ;;  %v1416_v39 = vmul.f32 %v2449_v10, %v2449_v10  ;;  %v1417_v62 = vmul.f32 %v2454_v45, %v2454_v45 }
 0x1d3   : > { %v1388_v38 = vadd.f32 %v1387_v16, %v2434_v24  ;;  %v1427_v46 = vadd.f32 %v1412_v14, %v1411_v12  ;;  %v1418_v30 = vmul.f32 %v2459_v34, %v2459_v34  ;;  %v1419_v52 = vmul.f32 %v2464_v27, %v2464_v27 }
 0x1d4   : > { %v1420_v61 = vmul.f32 %v2469_v6, %v2469_v6  ;;  %v1421_v18 = vmul.f32 %v2474_v17, %v2474_v17  ;;  %v1422_v21 = vmul.f32 %v2479_v54, %v2479_v54  ;;  %v1423_v23 = vmul.f32 %v2484_v32, %v2484_v32 }
 0x1d5   : > { %v1389_v35 = vadd.f32 %v1388_v38, %v2439_v7  ;;  %v1428_v29 = vadd.f32 %v1427_v46, %v1413_v25  ;;  %v1424_v44 = vmul.f32 %v1362_v48, %v1362_v48  ;;  %v1425_v41 = vmul.f32 %v1363_v8, %v1363_v8 }
 0x1d6   : > { %v1426_v51 = vmul.f32 %v1364_v4, %v1364_v4 }
 0x1d7   : > { %v1390_v36 = vadd.f32 %v1389_v35, %v2444_v40  ;;  %v1429_v58 = vadd.f32 %v1428_v29, %v1414_v1  ;;  %v1386_v15 = vld [vmem:[%s1876_s6] sm:$0x1]  ;;  %v1410_v28 = vld [vmem:[%s1876_s6 + $0x1] sm:$0x1] }
 0x1d9   : > { %v1391_v53 = vadd.f32 %v1390_v36, %v2449_v10  ;;  %v1430_v22 = vadd.f32 %v1429_v58, %v1415_v33 }
 0x1db   : > { %v1392_v24 = vadd.f32 %v1391_v53, %v2454_v45  ;;  %v1431_v63 = vadd.f32 %v1430_v22, %v1416_v39 }
 0x1dd   : > { %v1393_v7 = vadd.f32 %v1392_v24, %v2459_v34  ;;  %v1432_v9 = vadd.f32 %v1431_v63, %v1417_v62 }
 0x1df   : > { %v1394_v40 = vadd.f32 %v1393_v7, %v2464_v27  ;;  %v1433_v31 = vadd.f32 %v1432_v9, %v1418_v30 }
 0x1e1   : > { %v1395_v10 = vadd.f32 %v1394_v40, %v2469_v6  ;;  %v1434_v43 = vadd.f32 %v1433_v31, %v1419_v52 }
 0x1e3   : > { %v1396_v45 = vadd.f32 %v1395_v10, %v2474_v17  ;;  %v1435_v3 = vadd.f32 %v1434_v43, %v1420_v61 }
 0x1e5   : > { %v1397_v34 = vadd.f32 %v1396_v45, %v2479_v54  ;;  %v1436_v50 = vadd.f32 %v1435_v3, %v1421_v18 }
 0x1e7   : > { %v1398_v27 = vadd.f32 %v1397_v34, %v2484_v32  ;;  %v1437_v55 = vadd.f32 %v1436_v50, %v1422_v21 }
 0x1e9   : > { %v1399_v6 = vadd.f32 %v1398_v27, %v1362_v48  ;;  %v1438_v17 = vadd.f32 %v1437_v55, %v1423_v23 }
 0x1eb   : > { %v1400_v37 = vadd.f32 %v1399_v6, %v1363_v8  ;;  %v1439_v26 = vadd.f32 %v1438_v17, %v1424_v44 }
 0x1ed   : > { %v1401_v19 = vadd.f32 %v1400_v37, %v1364_v4  ;;  %v1440_v54 = vadd.f32 %v1439_v26, %v1425_v41 }
 0x1ef   : > { %v1402_v11 = vrot.slane %v1401_v19, 4  ;;  %v1441_v0 = vadd.f32 %v1440_v54, %v1426_v51 }
 0x1f1   : > { %v1403_v49 = vadd.f32 %v1402_v11, %v1401_v19  ;;  %v1442_v32 = vrot.slane %v1441_v0, 4 }
 0x1f3   : > { %v1404_v47 = vrot.slane %v1403_v49, 2  ;;  %v1443_v56 = vadd.f32 %v1442_v32, %v1441_v0 }
 0x1f5   : > { %v1405_v13 = vadd.f32 %v1404_v47, %v1403_v49  ;;  %v1444_v5 = vrot.slane %v1443_v56, 2 }
 0x1f7   : > { %v1406_v48 = vrot.slane %v1405_v13, 1  ;;  %v1445_v8 = vadd.f32 %v1444_v5, %v1443_v56 }
 0x1f9   : > { %v1407_v57 = vadd.f32 %v1406_v48, %v1405_v13  ;;  %v1446_v2 = vrot.slane %v1445_v8, 1 }
 0x1fb   : > { %v1408_v20 = vadd.f32 %v1407_v57, %v1386_v15  ;;  %v1447_v42 = vadd.f32 %v1446_v2, %v1445_v8 }
 0x1fd   : > { %1409 = vst [vmem:[%s1876_s6] sm:$0x1] %v1408_v20  ;;  %v1448_v59 = vadd.f32 %v1447_v42, %v1410_v28 }
 0x1ff   : > { %1449 = vst [vmem:[%s1876_s6 + $0x1] sm:$0x1] %v1448_v59 }
 0x200 PF: > { %s14_s16 = sadd.s32 1, %s1799_s16   ;;  %s2562_s12 = smov %s1791_s14 }
 0x201   : > { %p11_p8 = scmp.ge.s32.totalorder %s14_s16, 6   ;;  %s2563_s13 = smov %s1795_s15 }
 0x202   : > { %s2564_s14 = smov %s2567_s17  ;;  %s2565_s15 = smov %s2571_s18 }
 0x203   :  { %13 = sbr.rel (!%p11_p8) target bundleno = 3 (0x3), region = 83 }

</bundles_post_ra>
